<compile_context>
chip_gen: v5e
topology: v5e:2x2
jax: 0.10.0
libtpu: 0.0.40
codegen_flags: <defaults>
</compile_context>

<pallas_src>
import jax
import jax.numpy as jnp
from jax import lax
from jax.experimental import pallas as pl
from jax.experimental.pallas import tpu as pltpu


# ------------------------------ host-side glue -------------------------------

def _im2col_cm(x_nchw):
    """3x3 patches, stride 1, pad 1 -> channel-major (B, C*9, H*W).

    Row ordering within C*9 is (c, ky, kx) with c major, matching
    conv_w.reshape(C_out, C_in*9)."""
    B, C, H, W = x_nchw.shape
    xp = jnp.pad(x_nchw, ((0, 0), (0, 0), (1, 1), (1, 1)))
    cols = []
    for dy in range(3):
        for dx in range(3):
            cols.append(xp[:, :, dy:dy + H, dx:dx + W])
    p = jnp.stack(cols, axis=2)                       # (B, C, 9, H, W)
    return p.reshape(B, C * 9, H * W)


def _stride2_gather_mats(H, W, dtype=jnp.float32):
    """9 one-hot matrices S[t] of shape (H*W, H2*W2) such that  x @ S[t]
    gathers the tap-t input pixel of a 3x3 / stride-2 / pad-1 conv
    (columns are all-zero where the tap falls on zero padding)."""
    H2 = (H - 1) // 2 + 1
    W2 = (W - 1) // 2 + 1
    q = jnp.arange(H * W)
    mats = []
    for dy in range(3):
        for dx in range(3):
            yi = 2 * jnp.arange(H2) + dy - 1                          # (H2,)
            xi = 2 * jnp.arange(W2) + dx - 1                          # (W2,)
            valid = (((yi >= 0) & (yi < H))[:, None]
                     & ((xi >= 0) & (xi < W))[None, :])               # (H2, W2)
            src = yi[:, None] * W + xi[None, :]                       # (H2, W2)
            onehot = (q[:, None] == src.reshape(1, -1)) & valid.reshape(1, -1)
            mats.append(onehot.astype(dtype))
    return jnp.stack(mats, axis=0)                                    # (9, HW, HW2)


# ------------------------------- Pallas kernel --------------------------------

def _make_down_block_kernel(Cmid, Cout, G, HW, eps=1e-5):
    cpg = Cmid // G
    inv_n = 1.0 / float(HW * cpg)

    def kernel(patch_ref, w1_ref, temb_ref, wt_ref, const_ref,
               w2s_ref, b2_ref, gth_ref, skip_ref, down_ref):
        # ---- conv3x3(s=1,p=1) as one channel-major matmul (bf16 in, f32 acc)
        # (Cmid, Cin*9) @ (Cin*9, HW) -> (Cmid, HW); lane dim = HW (dense).
        h = jnp.dot(w1_ref[...], patch_ref[...],
                    preferred_element_type=jnp.float32)
        # fused time_proj Linear: (Cmid, T) @ (T, 1) -> (Cmid, 1)
        t = jnp.dot(wt_ref[...], temb_ref[...],
                    preferred_element_type=jnp.float32)
        consts = const_ref[...]                       # (Cmid, 3) packed constants
        h = h + consts[:, 0:1] + t                    # conv bias + time bias + proj

        # ---- GroupNorm(G): two-pass stats per image (VPU/XLU reductions) ----
        ch_sum = jnp.sum(h, axis=1, keepdims=True)                    # (Cmid, 1)
        if cpg == 1:
            # each channel is its own group (this config: GroupNorm(8, 8))
            mean = ch_sum * inv_n
            centered = h - mean
            var = jnp.sum(centered * centered, axis=1, keepdims=True) * inv_n
        else:
            # general case: fold channel stats within each group of cpg channels
            gmean = jnp.sum(ch_sum.reshape(G, cpg), axis=1,
                            keepdims=True) * inv_n                    # (G, 1)
            mean = jnp.broadcast_to(gmean, (G, cpg)).reshape(Cmid, 1)
            centered = h - mean
            csq = jnp.sum(centered * centered, axis=1, keepdims=True)
            gvar = jnp.sum(csq.reshape(G, cpg), axis=1,
                           keepdims=True) * inv_n
            var = jnp.broadcast_to(gvar, (G, cpg)).reshape(Cmid, 1)
        hn = centered * lax.rsqrt(var + eps)
        hn = hn * consts[:, 1:2] + consts[:, 2:3]                     # gamma, beta

        # ---- SiLU (Dropout2d = identity in eval; attention = Identity) ------
        skip_act = hn * jax.nn.sigmoid(hn)
        skip_ref[...] = skip_act                      # lane-dense (Cmid, HW) store

        # ---- downsample conv3x3(s=2,p=1), fused: skip never leaves VMEM -----
        # a[t*Cout + co, q] = sum_ci w2[co, ci, t] * skip[ci, q]
        a = jnp.dot(w2s_ref[...], skip_act, preferred_element_type=jnp.float32)
        down = b2_ref[...]                            # (Cout, 1), broadcasts
        for tap in range(9):                          # 9 one-hot gather matmuls
            a_t = a[tap * Cout:(tap + 1) * Cout, :]                   # (Cout, HW)
            down = down + jnp.dot(a_t, gth_ref[tap],
                                  preferred_element_type=jnp.float32)
        down_ref[...] = down

    return kernel


# ------------------------------- module wrapper -------------------------------

def down_block_forward(x, time_emb, params):
    """x: (B, Cin, H, W) f32, time_emb: (B, T) f32 -> (x_down, skip), NCHW."""
    B, Cin, H, W = x.shape
    w1, b1 = params["conv_w"], params["conv_b"]          # (Cmid,Cin,3,3), (Cmid,)
    gamma, beta = params["gn_gamma"], params["gn_beta"]  # (Cmid,)
    wt, bt = params["time_w"], params["time_b"]          # (T,Cmid), (Cmid,)
    w2, b2 = params["down_w"], params["down_b"]          # (Cout,Cmid,3,3), (Cout,)
    Cmid, Cout, T = w1.shape[0], w2.shape[0], wt.shape[0]
    G = 8
    H2, W2 = (H - 1) // 2 + 1, (W - 1) // 2 + 1
    HW, HW2, K1 = H * W, H2 * W2, Cin * 9

    # kernel operands, channel-major / HW-last
    patches = _im2col_cm(x).astype(jnp.bfloat16)          # (B, K1, HW)   bf16
    w1_mat = w1.reshape(Cmid, K1).astype(jnp.bfloat16)    # (Cmid, K1)    bf16
    temb_col = time_emb.reshape(B, T, 1).astype(jnp.float32)
    wt_mat = wt.T.astype(jnp.float32)                     # (Cmid, T)
    consts = jnp.stack([b1 + bt, gamma, beta], axis=1)    # (Cmid, 3) packed
    # stride-2 conv weights stacked with rows ordered (tap, c_out)
    w2_stk = jnp.transpose(w2, (2, 3, 0, 1)).reshape(9 * Cout, Cmid)
    b2_col = b2.reshape(Cout, 1)
    gather = _stride2_gather_mats(H, W, jnp.float32)      # (9, HW, HW2), constant

    kernel = _make_down_block_kernel(Cmid, Cout, G, HW)

    skip_flat, down_flat = pl.pallas_call(
        kernel,
        out_shape=(jax.ShapeDtypeStruct((B, Cmid, HW), jnp.float32),
                   jax.ShapeDtypeStruct((B, Cout, HW2), jnp.float32)),
        grid_spec=pltpu.PrefetchScalarGridSpec(
            num_scalar_prefetch=0,
            grid=(B,),
            in_specs=[
                pl.BlockSpec((None, K1, HW), lambda b: (b, 0, 0)),    # patches
                pl.BlockSpec((Cmid, K1), lambda b: (0, 0)),           # conv1 w
                pl.BlockSpec((None, T, 1), lambda b: (b, 0, 0)),      # time emb
                pl.BlockSpec((Cmid, T), lambda b: (0, 0)),            # time_proj w
                pl.BlockSpec((Cmid, 3), lambda b: (0, 0)),            # bias/gamma/beta
                pl.BlockSpec((9 * Cout, Cmid), lambda b: (0, 0)),     # down w stacked
                pl.BlockSpec((Cout, 1), lambda b: (0, 0)),            # down bias
                pl.BlockSpec((9, HW, HW2), lambda b: (0, 0, 0)),      # gather mats
            ],
            out_specs=[
                pl.BlockSpec((None, Cmid, HW), lambda b: (b, 0, 0)),  # skip
                pl.BlockSpec((None, Cout, HW2), lambda b: (b, 0, 0)),  # x_down
            ],
        ),
        compiler_params=pltpu.CompilerParams(
            dimension_semantics=("parallel",)),   # B=2 images -> 2 TCs on v7x
    )(patches, w1_mat, temb_col, wt_mat, consts, w2_stk, b2_col, gather)

    # channel-major outputs are already NCHW: free reshapes, no transpose.
    skip = skip_flat.reshape(B, Cmid, H, W)
    x_down = down_flat.reshape(B, Cout, H2, W2)
    # TODO(synk): Dropout2d channel masking (training mode) not implemented;
    #             eval-mode forward == identity, matching module.eval().
    return x_down, skip


# ------------------------------ pure-JAX reference ----------------------------

def _reference(x, time_emb, params):
    t = time_emb @ params["time_w"] + params["time_b"]
    h = lax.conv_general_dilated(
        x, params["conv_w"], (1, 1), ((1, 1), (1, 1)),
        dimension_numbers=("NCHW", "OIHW", "NCHW"),
        precision=lax.Precision.HIGHEST)
    h = h + params["conv_b"][None, :, None, None] + t[:, :, None, None]
    B, C, H, W = h.shape
    G = 8
    hg = h.reshape(B, G, C // G, H, W)
    mean = hg.mean(axis=(2, 3, 4), keepdims=True)
    var = hg.var(axis=(2, 3, 4), keepdims=True)
    hn = ((hg - mean) / jnp.sqrt(var + 1e-5)).reshape(B, C, H, W)
    hn = (hn * params["gn_gamma"][None, :, None, None]
          + params["gn_beta"][None, :, None, None])
    skip = hn * jax.nn.sigmoid(hn)
    y = lax.conv_general_dilated(
        skip, params["down_w"], (2, 2), ((1, 1), (1, 1)),
        dimension_numbers=("NCHW", "OIHW", "NCHW"),
        precision=lax.Precision.HIGHEST)
    y = y + params["down_b"][None, :, None, None]
    return y, skip


# ------------------------------------- main ------------------------------------

if __name__ == "__main__":
    # DownBlock(in_channels=4, out_channels=16, time_emb_dims=32,
    #           dropout=0.1, use_attention=False), eval mode.
    B, Cin, H, W = 2, 4, 16, 16
    Cout, T = 16, 32
    Cmid = Cout // 2  # 8

    key = jax.random.PRNGKey(0)
    ks = jax.random.split(key, 8)
    params = {
        "conv_w": 0.2 * jax.random.normal(ks[0], (Cmid, Cin, 3, 3), jnp.float32),
        "conv_b": 0.1 * jax.random.normal(ks[1], (Cmid,), jnp.float32),
        "gn_gamma": 1.0 + 0.1 * jax.random.normal(ks[2], (Cmid,), jnp.float32),
        "gn_beta": 0.1 * jax.random.normal(ks[3], (Cmid,), jnp.float32),
        "time_w": 0.2 * jax.random.normal(ks[4], (T, Cmid), jnp.float32),
        "time_b": 0.1 * jax.random.normal(ks[5], (Cmid,), jnp.float32),
        "down_w": 0.2 * jax.random.normal(ks[6], (Cout, Cmid, 3, 3), jnp.float32),
        "down_b": 0.1 * jax.random.normal(ks[7], (Cout,), jnp.float32),
    }

    kx, kt = jax.random.split(jax.random.PRNGKey(1))
    x = jax.random.normal(kx, (B, Cin, H, W), jnp.float32)
    time_emb = jax.random.normal(kt, (B, T), jnp.float32)

    x_down, skip = jax.jit(down_block_forward)(x, time_emb, params)
    jax.block_until_ready((x_down, skip))

    x_ref, skip_ref = _reference(x, time_emb, params)
    assert x_down.shape == (B, Cout, H // 2, W // 2)
    assert skip.shape == (B, Cmid, H, W)
    assert jnp.allclose(skip, skip_ref, rtol=2e-2, atol=2e-2)
    assert jnp.allclose(x_down, x_ref, rtol=2e-2, atol=2e-2)

    print("KERNEL_OK")
</pallas_src>

<mosaic_0001>
module attributes {stable_mosaic.version = 11 : i64} {
  func.func @kernel(%arg0: i32, %arg1: memref<1x36x256xbf16, #tpu.memory_space<vmem>>, %arg2: memref<8x36xbf16, #tpu.memory_space<vmem>>, %arg3: memref<1x32x1xf32, #tpu.memory_space<vmem>>, %arg4: memref<8x32xf32, #tpu.memory_space<vmem>>, %arg5: memref<8x3xf32, #tpu.memory_space<vmem>>, %arg6: memref<144x8xf32, #tpu.memory_space<vmem>>, %arg7: memref<16x1xf32, #tpu.memory_space<vmem>>, %arg8: memref<9x256x64xf32, #tpu.memory_space<vmem>>, %arg9: memref<1x8x256xf32, #tpu.memory_space<vmem>>, %arg10: memref<1x16x64xf32, #tpu.memory_space<vmem>>) attributes {dimension_semantics = [#tpu.dimension_semantics<parallel>], iteration_bounds = array<i64: 2>, scalar_prefetch = 0 : i64, scratch_operands = 0 : i64, tpu.core_type = #tpu.core_type<tc>, window_params = [{transform_indices = @transform_0, window_bounds = array<i64: 1, 36, 256>}, {pipeline_mode = #tpu.pipeline_mode<synchronous>, transform_indices = @transform_1, window_bounds = array<i64: 8, 36>}, {transform_indices = @transform_2, window_bounds = array<i64: 1, 32, 1>}, {pipeline_mode = #tpu.pipeline_mode<synchronous>, transform_indices = @transform_3, window_bounds = array<i64: 8, 32>}, {pipeline_mode = #tpu.pipeline_mode<synchronous>, transform_indices = @transform_4, window_bounds = array<i64: 8, 3>}, {pipeline_mode = #tpu.pipeline_mode<synchronous>, transform_indices = @transform_5, window_bounds = array<i64: 144, 8>}, {pipeline_mode = #tpu.pipeline_mode<synchronous>, transform_indices = @transform_6, window_bounds = array<i64: 16, 1>}, {pipeline_mode = #tpu.pipeline_mode<synchronous>, transform_indices = @transform_7, window_bounds = array<i64: 9, 256, 64>}, {transform_indices = @transform_8, window_bounds = array<i64: 1, 8, 256>}, {transform_indices = @transform_9, window_bounds = array<i64: 1, 16, 64>}]} {
    %c0 = arith.constant 0 : index
    %c0_0 = arith.constant 0 : index
    %0 = vector.load %arg2[%c0, %c0_0] : memref<8x36xbf16, #tpu.memory_space<vmem>>, vector<8x36xbf16>
    %c0_1 = arith.constant 0 : index
    %c0_2 = arith.constant 0 : index
    %c0_3 = arith.constant 0 : index
    %1 = vector.load %arg1[%c0_1, %c0_2, %c0_3] : memref<1x36x256xbf16, #tpu.memory_space<vmem>>, vector<1x36x256xbf16>
    %2 = vector.shape_cast %1 : vector<1x36x256xbf16> to vector<36x256xbf16>
    %cst = arith.constant dense<0.000000e+00> : vector<8x256xf32>
    %3 = tpu.matmul %0, %2, %cst {dimension_numbers = #tpu.dot_dimension_numbers<[1], [0], [0], [1], [0, 0, 1, 1], [], []>} : vector<8x36xbf16>, vector<36x256xbf16>, vector<8x256xf32> -> vector<8x256xf32>
    %c0_4 = arith.constant 0 : index
    %c0_5 = arith.constant 0 : index
    %4 = vector.load %arg4[%c0_4, %c0_5] : memref<8x32xf32, #tpu.memory_space<vmem>>, vector<8x32xf32>
    %c0_6 = arith.constant 0 : index
    %c0_7 = arith.constant 0 : index
    %c0_8 = arith.constant 0 : index
    %5 = vector.load %arg3[%c0_6, %c0_7, %c0_8] : memref<1x32x1xf32, #tpu.memory_space<vmem>>, vector<1x32x1xf32>
    %6 = vector.shape_cast %5 : vector<1x32x1xf32> to vector<32x1xf32>
    %cst_9 = arith.constant dense<0.000000e+00> : vector<8x1xf32>
    %7 = tpu.matmul %4, %6, %cst_9 {dimension_numbers = #tpu.dot_dimension_numbers<[1], [0], [0], [1], [0, 0, 1, 1], [], []>} : vector<8x32xf32>, vector<32x1xf32>, vector<8x1xf32> -> vector<8x1xf32>
    %c0_10 = arith.constant 0 : index
    %c0_11 = arith.constant 0 : index
    %8 = vector.load %arg5[%c0_10, %c0_11] : memref<8x3xf32, #tpu.memory_space<vmem>>, vector<8x3xf32>
    %9 = vector.extract_strided_slice %8 {offsets = [0, 0], sizes = [8, 1], strides = [1, 1]} : vector<8x3xf32> to vector<8x1xf32>
    %10 = vector.broadcast %9 : vector<8x1xf32> to vector<8x256xf32>
    %11 = arith.addf %3, %10 : vector<8x256xf32>
    %12 = vector.broadcast %7 : vector<8x1xf32> to vector<8x256xf32>
    %13 = arith.addf %11, %12 : vector<8x256xf32>
    %cst_12 = arith.constant dense<0.000000e+00> : vector<8xf32>
    %14 = vector.multi_reduction <add>, %13, %cst_12 [1] : vector<8x256xf32> to vector<8xf32>
    %15 = vector.shape_cast %14 : vector<8xf32> to vector<8x1xf32>
    %cst_13 = arith.constant 3.906250e-03 : f32
    %16 = vector.broadcast %cst_13 : f32 to vector<8x1xf32>
    %17 = arith.mulf %15, %16 : vector<8x1xf32>
    %18 = vector.broadcast %17 : vector<8x1xf32> to vector<8x256xf32>
    %19 = arith.subf %13, %18 : vector<8x256xf32>
    %20 = arith.mulf %19, %19 : vector<8x256xf32>
    %cst_14 = arith.constant dense<0.000000e+00> : vector<8xf32>
    %21 = vector.multi_reduction <add>, %20, %cst_14 [1] : vector<8x256xf32> to vector<8xf32>
    %22 = vector.shape_cast %21 : vector<8xf32> to vector<8x1xf32>
    %cst_15 = arith.constant 3.906250e-03 : f32
    %23 = vector.broadcast %cst_15 : f32 to vector<8x1xf32>
    %24 = arith.mulf %22, %23 : vector<8x1xf32>
    %cst_16 = arith.constant 9.99999974E-6 : f32
    %25 = vector.broadcast %cst_16 : f32 to vector<8x1xf32>
    %26 = arith.addf %24, %25 : vector<8x1xf32>
    %27 = math.rsqrt %26 : vector<8x1xf32>
    %28 = vector.broadcast %27 : vector<8x1xf32> to vector<8x256xf32>
    %29 = arith.mulf %19, %28 : vector<8x256xf32>
    %30 = vector.extract_strided_slice %8 {offsets = [0, 1], sizes = [8, 1], strides = [1, 1]} : vector<8x3xf32> to vector<8x1xf32>
    %31 = vector.broadcast %30 : vector<8x1xf32> to vector<8x256xf32>
    %32 = arith.mulf %29, %31 : vector<8x256xf32>
    %33 = vector.extract_strided_slice %8 {offsets = [0, 2], sizes = [8, 1], strides = [1, 1]} : vector<8x3xf32> to vector<8x1xf32>
    %34 = vector.broadcast %33 : vector<8x1xf32> to vector<8x256xf32>
    %35 = arith.addf %32, %34 : vector<8x256xf32>
    %36 = arith.negf %35 : vector<8x256xf32>
    %37 = math.exp %36 : vector<8x256xf32>
    %cst_17 = arith.constant 1.000000e+00 : f32
    %38 = vector.broadcast %cst_17 : f32 to vector<8x256xf32>
    %39 = arith.addf %38, %37 : vector<8x256xf32>
    %40 = arith.divf %38, %39 : vector<8x256xf32>
    %41 = arith.mulf %35, %40 : vector<8x256xf32>
    %c0_18 = arith.constant 0 : index
    %c0_19 = arith.constant 0 : index
    %c0_20 = arith.constant 0 : index
    %42 = vector.load %arg9[%c0_18, %c0_19, %c0_20] : memref<1x8x256xf32, #tpu.memory_space<vmem>>, vector<1x8x256xf32>
    %43 = vector.shape_cast %42 : vector<1x8x256xf32> to vector<8x256xf32>
    %44 = vector.shape_cast %41 : vector<8x256xf32> to vector<1x8x256xf32>
    tpu.vector_store %arg9[%c0_18, %c0_19, %c0_20], %44 {strides = array<i32>} : memref<1x8x256xf32, #tpu.memory_space<vmem>>, vector<1x8x256xf32>,
    %c0_21 = arith.constant 0 : index
    %c0_22 = arith.constant 0 : index
    %45 = vector.load %arg6[%c0_21, %c0_22] : memref<144x8xf32, #tpu.memory_space<vmem>>, vector<144x8xf32>
    %cst_23 = arith.constant dense<0.000000e+00> : vector<144x256xf32>
    %46 = tpu.matmul %45, %41, %cst_23 {dimension_numbers = #tpu.dot_dimension_numbers<[1], [0], [0], [1], [0, 0, 1, 1], [], []>} : vector<144x8xf32>, vector<8x256xf32>, vector<144x256xf32> -> vector<144x256xf32>
    %c0_24 = arith.constant 0 : index
    %c0_25 = arith.constant 0 : index
    %47 = vector.load %arg7[%c0_24, %c0_25] : memref<16x1xf32, #tpu.memory_space<vmem>>, vector<16x1xf32>
    %48 = vector.extract_strided_slice %46 {offsets = [0, 0], sizes = [16, 256], strides = [1, 1]} : vector<144x256xf32> to vector<16x256xf32>
    %c0_26 = arith.constant 0 : index
    %c0_27 = arith.constant 0 : index
    %c0_28 = arith.constant 0 : index
    %49 = vector.load %arg8[%c0_26, %c0_27, %c0_28] : memref<9x256x64xf32, #tpu.memory_space<vmem>>, vector<1x256x64xf32>
    %50 = vector.shape_cast %49 : vector<1x256x64xf32> to vector<256x64xf32>
    %cst_29 = arith.constant dense<0.000000e+00> : vector<16x64xf32>
    %51 = tpu.matmul %48, %50, %cst_29 {dimension_numbers = #tpu.dot_dimension_numbers<[1], [0], [0], [1], [0, 0, 1, 1], [], []>} : vector<16x256xf32>, vector<256x64xf32>, vector<16x64xf32> -> vector<16x64xf32>
    %52 = vector.broadcast %47 : vector<16x1xf32> to vector<16x64xf32>
    %53 = arith.addf %52, %51 : vector<16x64xf32>
    %54 = vector.extract_strided_slice %46 {offsets = [16, 0], sizes = [16, 256], strides = [1, 1]} : vector<144x256xf32> to vector<16x256xf32>
    %c1 = arith.constant 1 : index
    %c0_30 = arith.constant 0 : index
    %c0_31 = arith.constant 0 : index
    %55 = vector.load %arg8[%c1, %c0_30, %c0_31] : memref<9x256x64xf32, #tpu.memory_space<vmem>>, vector<1x256x64xf32>
    %56 = vector.shape_cast %55 : vector<1x256x64xf32> to vector<256x64xf32>
    %cst_32 = arith.constant dense<0.000000e+00> : vector<16x64xf32>
    %57 = tpu.matmul %54, %56, %cst_32 {dimension_numbers = #tpu.dot_dimension_numbers<[1], [0], [0], [1], [0, 0, 1, 1], [], []>} : vector<16x256xf32>, vector<256x64xf32>, vector<16x64xf32> -> vector<16x64xf32>
    %58 = arith.addf %53, %57 : vector<16x64xf32>
    %59 = vector.extract_strided_slice %46 {offsets = [32, 0], sizes = [16, 256], strides = [1, 1]} : vector<144x256xf32> to vector<16x256xf32>
    %c2 = arith.constant 2 : index
    %c0_33 = arith.constant 0 : index
    %c0_34 = arith.constant 0 : index
    %60 = vector.load %arg8[%c2, %c0_33, %c0_34] : memref<9x256x64xf32, #tpu.memory_space<vmem>>, vector<1x256x64xf32>
    %61 = vector.shape_cast %60 : vector<1x256x64xf32> to vector<256x64xf32>
    %cst_35 = arith.constant dense<0.000000e+00> : vector<16x64xf32>
    %62 = tpu.matmul %59, %61, %cst_35 {dimension_numbers = #tpu.dot_dimension_numbers<[1], [0], [0], [1], [0, 0, 1, 1], [], []>} : vector<16x256xf32>, vector<256x64xf32>, vector<16x64xf32> -> vector<16x64xf32>
    %63 = arith.addf %58, %62 : vector<16x64xf32>
    %64 = vector.extract_strided_slice %46 {offsets = [48, 0], sizes = [16, 256], strides = [1, 1]} : vector<144x256xf32> to vector<16x256xf32>
    %c3 = arith.constant 3 : index
    %c0_36 = arith.constant 0 : index
    %c0_37 = arith.constant 0 : index
    %65 = vector.load %arg8[%c3, %c0_36, %c0_37] : memref<9x256x64xf32, #tpu.memory_space<vmem>>, vector<1x256x64xf32>
    %66 = vector.shape_cast %65 : vector<1x256x64xf32> to vector<256x64xf32>
    %cst_38 = arith.constant dense<0.000000e+00> : vector<16x64xf32>
    %67 = tpu.matmul %64, %66, %cst_38 {dimension_numbers = #tpu.dot_dimension_numbers<[1], [0], [0], [1], [0, 0, 1, 1], [], []>} : vector<16x256xf32>, vector<256x64xf32>, vector<16x64xf32> -> vector<16x64xf32>
    %68 = arith.addf %63, %67 : vector<16x64xf32>
    %69 = vector.extract_strided_slice %46 {offsets = [64, 0], sizes = [16, 256], strides = [1, 1]} : vector<144x256xf32> to vector<16x256xf32>
    %c4 = arith.constant 4 : index
    %c0_39 = arith.constant 0 : index
    %c0_40 = arith.constant 0 : index
    %70 = vector.load %arg8[%c4, %c0_39, %c0_40] : memref<9x256x64xf32, #tpu.memory_space<vmem>>, vector<1x256x64xf32>
    %71 = vector.shape_cast %70 : vector<1x256x64xf32> to vector<256x64xf32>
    %cst_41 = arith.constant dense<0.000000e+00> : vector<16x64xf32>
    %72 = tpu.matmul %69, %71, %cst_41 {dimension_numbers = #tpu.dot_dimension_numbers<[1], [0], [0], [1], [0, 0, 1, 1], [], []>} : vector<16x256xf32>, vector<256x64xf32>, vector<16x64xf32> -> vector<16x64xf32>
    %73 = arith.addf %68, %72 : vector<16x64xf32>
    %74 = vector.extract_strided_slice %46 {offsets = [80, 0], sizes = [16, 256], strides = [1, 1]} : vector<144x256xf32> to vector<16x256xf32>
    %c5 = arith.constant 5 : index
    %c0_42 = arith.constant 0 : index
    %c0_43 = arith.constant 0 : index
    %75 = vector.load %arg8[%c5, %c0_42, %c0_43] : memref<9x256x64xf32, #tpu.memory_space<vmem>>, vector<1x256x64xf32>
    %76 = vector.shape_cast %75 : vector<1x256x64xf32> to vector<256x64xf32>
    %cst_44 = arith.constant dense<0.000000e+00> : vector<16x64xf32>
    %77 = tpu.matmul %74, %76, %cst_44 {dimension_numbers = #tpu.dot_dimension_numbers<[1], [0], [0], [1], [0, 0, 1, 1], [], []>} : vector<16x256xf32>, vector<256x64xf32>, vector<16x64xf32> -> vector<16x64xf32>
    %78 = arith.addf %73, %77 : vector<16x64xf32>
    %79 = vector.extract_strided_slice %46 {offsets = [96, 0], sizes = [16, 256], strides = [1, 1]} : vector<144x256xf32> to vector<16x256xf32>
    %c6 = arith.constant 6 : index
    %c0_45 = arith.constant 0 : index
    %c0_46 = arith.constant 0 : index
    %80 = vector.load %arg8[%c6, %c0_45, %c0_46] : memref<9x256x64xf32, #tpu.memory_space<vmem>>, vector<1x256x64xf32>
    %81 = vector.shape_cast %80 : vector<1x256x64xf32> to vector<256x64xf32>
    %cst_47 = arith.constant dense<0.000000e+00> : vector<16x64xf32>
    %82 = tpu.matmul %79, %81, %cst_47 {dimension_numbers = #tpu.dot_dimension_numbers<[1], [0], [0], [1], [0, 0, 1, 1], [], []>} : vector<16x256xf32>, vector<256x64xf32>, vector<16x64xf32> -> vector<16x64xf32>
    %83 = arith.addf %78, %82 : vector<16x64xf32>
    %84 = vector.extract_strided_slice %46 {offsets = [112, 0], sizes = [16, 256], strides = [1, 1]} : vector<144x256xf32> to vector<16x256xf32>
    %c7 = arith.constant 7 : index
    %c0_48 = arith.constant 0 : index
    %c0_49 = arith.constant 0 : index
    %85 = vector.load %arg8[%c7, %c0_48, %c0_49] : memref<9x256x64xf32, #tpu.memory_space<vmem>>, vector<1x256x64xf32>
    %86 = vector.shape_cast %85 : vector<1x256x64xf32> to vector<256x64xf32>
    %cst_50 = arith.constant dense<0.000000e+00> : vector<16x64xf32>
    %87 = tpu.matmul %84, %86, %cst_50 {dimension_numbers = #tpu.dot_dimension_numbers<[1], [0], [0], [1], [0, 0, 1, 1], [], []>} : vector<16x256xf32>, vector<256x64xf32>, vector<16x64xf32> -> vector<16x64xf32>
    %88 = arith.addf %83, %87 : vector<16x64xf32>
    %89 = vector.extract_strided_slice %46 {offsets = [128, 0], sizes = [16, 256], strides = [1, 1]} : vector<144x256xf32> to vector<16x256xf32>
    %c8 = arith.constant 8 : index
    %c0_51 = arith.constant 0 : index
    %c0_52 = arith.constant 0 : index
    %90 = vector.load %arg8[%c8, %c0_51, %c0_52] : memref<9x256x64xf32, #tpu.memory_space<vmem>>, vector<1x256x64xf32>
    %91 = vector.shape_cast %90 : vector<1x256x64xf32> to vector<256x64xf32>
    %cst_53 = arith.constant dense<0.000000e+00> : vector<16x64xf32>
    %92 = tpu.matmul %89, %91, %cst_53 {dimension_numbers = #tpu.dot_dimension_numbers<[1], [0], [0], [1], [0, 0, 1, 1], [], []>} : vector<16x256xf32>, vector<256x64xf32>, vector<16x64xf32> -> vector<16x64xf32>
    %93 = arith.addf %88, %92 : vector<16x64xf32>
    %c0_54 = arith.constant 0 : index
    %c0_55 = arith.constant 0 : index
    %c0_56 = arith.constant 0 : index
    %94 = vector.load %arg10[%c0_54, %c0_55, %c0_56] : memref<1x16x64xf32, #tpu.memory_space<vmem>>, vector<1x16x64xf32>
    %95 = vector.shape_cast %94 : vector<1x16x64xf32> to vector<16x64xf32>
    %96 = vector.shape_cast %93 : vector<16x64xf32> to vector<1x16x64xf32>
    tpu.vector_store %arg10[%c0_54, %c0_55, %c0_56], %96 {strides = array<i32>} : memref<1x16x64xf32, #tpu.memory_space<vmem>>, vector<1x16x64xf32>,
    return
  }
  func.func @transform_0(%arg0: i32) -> (i32, i32, i32) {
    %c0_i32 = arith.constant 0 : i32
    %c0_i32_0 = arith.constant 0 : i32
    %c0_i32_1 = arith.constant 0 : i32
    return %arg0, %c0_i32, %c0_i32_0 : i32, i32, i32
  }
  func.func @transform_1(%arg0: i32) -> (i32, i32) {
    %c0_i32 = arith.constant 0 : i32
    %c0_i32_0 = arith.constant 0 : i32
    %c0_i32_1 = arith.constant 0 : i32
    return %c0_i32, %c0_i32_0 : i32, i32
  }
  func.func @transform_2(%arg0: i32) -> (i32, i32, i32) {
    %c0_i32 = arith.constant 0 : i32
    %c0_i32_0 = arith.constant 0 : i32
    %c0_i32_1 = arith.constant 0 : i32
    return %arg0, %c0_i32, %c0_i32_0 : i32, i32, i32
  }
  func.func @transform_3(%arg0: i32) -> (i32, i32) {
    %c0_i32 = arith.constant 0 : i32
    %c0_i32_0 = arith.constant 0 : i32
    %c0_i32_1 = arith.constant 0 : i32
    return %c0_i32, %c0_i32_0 : i32, i32
  }
  func.func @transform_4(%arg0: i32) -> (i32, i32) {
    %c0_i32 = arith.constant 0 : i32
    %c0_i32_0 = arith.constant 0 : i32
    %c0_i32_1 = arith.constant 0 : i32
    return %c0_i32, %c0_i32_0 : i32, i32
  }
  func.func @transform_5(%arg0: i32) -> (i32, i32) {
    %c0_i32 = arith.constant 0 : i32
    %c0_i32_0 = arith.constant 0 : i32
    %c0_i32_1 = arith.constant 0 : i32
    return %c0_i32, %c0_i32_0 : i32, i32
  }
  func.func @transform_6(%arg0: i32) -> (i32, i32) {
    %c0_i32 = arith.constant 0 : i32
    %c0_i32_0 = arith.constant 0 : i32
    %c0_i32_1 = arith.constant 0 : i32
    return %c0_i32, %c0_i32_0 : i32, i32
  }
  func.func @transform_7(%arg0: i32) -> (i32, i32, i32) {
    %c0_i32 = arith.constant 0 : i32
    %c0_i32_0 = arith.constant 0 : i32
    %c0_i32_1 = arith.constant 0 : i32
    %c0_i32_2 = arith.constant 0 : i32
    return %c0_i32, %c0_i32_0, %c0_i32_1 : i32, i32, i32
  }
  func.func @transform_8(%arg0: i32) -> (i32, i32, i32) {
    %c0_i32 = arith.constant 0 : i32
    %c0_i32_0 = arith.constant 0 : i32
    %c0_i32_1 = arith.constant 0 : i32
    return %arg0, %c0_i32, %c0_i32_0 : i32, i32, i32
  }
  func.func @transform_9(%arg0: i32) -> (i32, i32, i32) {
    %c0_i32 = arith.constant 0 : i32
    %c0_i32_0 = arith.constant 0 : i32
    %c0_i32_1 = arith.constant 0 : i32
    return %arg0, %c0_i32, %c0_i32_0 : i32, i32, i32
  }
}

</mosaic_0001>

<bundles_post_ra>
// kernel: down_block_forward.1
= control target key start
LH: loop header
LB: loop body
LE: loop exit
PB: predicated region body
PF: predicated region fallthrough
CT: control target
= control target key end

     0   :  { %s2035_s30 = smov 0   ;;  %s3064_s0 = inlined_call_operand.vmem [shape: bf16[2,36,256], index: 0, kind: input, shape index: {}]   ;;  %s3065_s1 = inlined_call_operand.vmem [shape: bf16[8,36], index: 1, kind: input, shape index: {}]   ;;  %s3066_s2 = inlined_call_operand.vmem [shape: f32[2,32,1], index: 2, kind: input, shape index: {}]   ;;  %s3067_s3 = inlined_call_operand.vmem [shape: f32[8,32], index: 3, kind: input, shape index: {}]   ;;  %s3068_s4 = inlined_call_operand.vmem [shape: f32[8,3], index: 4, kind: input, shape index: {}]   ;;  %s3069_s5 = inlined_call_operand.vmem [shape: f32[144,8], index: 5, kind: input, shape index: {}]   ;;  %s3070_s6 = inlined_call_operand.vmem [shape: f32[16,1], index: 6, kind: input, shape index: {}]   ;;  %s3071_s7 = inlined_call_operand.vmem [shape: f32[9,256,64], index: 7, kind: input, shape index: {}]   ;;  %s3072_s8 = inlined_call_operand.vmem [shape: f32[2,8,256], index: 8, kind: output, shape index: {0}]   ;;  %s3073_s9 = inlined_call_operand.vmem [shape: f32[2,16,64], index: 9, kind: output, shape index: {1}]  }
   0x1 LB: > { %s1614_s10 = sadd.s32 4294967295, %s1980_s30   ;;  %p1618_p0 = scmp.ge.s32.totalorder %s1980_s30, 1  ;;  %s1980_s30 = sphi %s2035_s30, %s20_s30  }
   0x2   : > { %p300_p1 = scmp.lt.s32.totalorder %s1980_s30, 3 }
   0x4   : > { %p301_p2 = pnand %p1618_p0, %p300_p1 }
   0x5   : > { %p346_p3 = scmp.lt.s32.totalorder (!%p301_p2), %s1614_s10, 1 }
   0x6   : > { %304 = sbr.rel (%p301_p2) target bundleno = 971 (0x3cb), region = 52 }
   0xb   : > { %v2046_v0 = vld [vmem:[%s3068_s4] sm:$0xff]  ;;  %s3075_s10 = smov (!%p346_p3, %s1614_s10), 1  ;;  %v1982_v1 = vmov 0   ;;  %vm437_vm0 = vcmask 1041408   ;;  %vm378_vm1 = vcmask 261120   ;;  %vm433_vm2 = vcmask 293888  }
   0xc   : > { %1960 = vset.pattern.permute.xlu0 %v1982_v1  ;;  %1963 = vset.pattern.permute.xlu1 %v1982_v1  ;;  %s1948_s13 = smul.u32 40, %s3075_s10  ;;  %s1941_s14 = sshll.u32 %s3075_s10, 5  ;;  %v373_v13 = vld [vmem:[%s3067_s3] sm:$0xff]  ;;  %v1983_v40 = vmov 1   ;;  %v1984_v41 = vmov 2   ;;  %vm574_vm14 = vcmask 64512  }
   0xd   : > { %405 = vperm.xlu0 %1960, %v2046_v0   ;;  %s355_s17 = scalar_lea.vmem %s3066_s2, %s1941_s14  ;;  %v367_v26 = vld [vmem:[%s3065_s1] sm:$0xf]  ;;  %1961 = vset.pattern.permute.xlu2 %v1983_v40  ;;  %s1942_s27 = sshll.u32 %s3075_s10, 4  ;;  %vm1511_vm15 = vcmask 523264  }
   0xe   : > { %s2059_s20 = scalar_lea.vmem %s3064_s0, %s1948_s13  ;;  %v377_v2 = vld [vmem:[%s355_s17 + $0x18] sm:$0xff]  ;;  %v376_v3 = vld [vmem:[%s355_s17 + $0x10] sm:$0xff]  ;;  %v375_v5 = vld [vmem:[%s355_s17 + $0x8] sm:$0xff]  ;;  %503 = vperm.xlu2 %1961, %v2046_v0   ;;  %s360_s11 = scalar_lea.vmem %s3072_s8, %s1942_s27 }
   0xf   : > { %394 = vmatpush.msra.mxu1 %v377_v2  ;;  %v372_v4 = vld [vmem:[%s2059_s20 + $0x20] sm:$0x33]  ;;  %v1946_v10 = vld [vmem:[%s2059_s20 + $0x14] sm:$0xf]  ;;  %v1639_v11 = vld [vmem:[%s2059_s20 + $0x18] sm:$0xf0]  ;;  %s365_s16 = scalar_lea.vmem %s3073_s9, %s1942_s27 }
  0x10   : > { %v422_v6 = vunpack.c.h.b16 %v372_v4  ;;  %v421_v7 = vunpack.c.l.b16 %v372_v4  ;;  %v374_v8 = vld [vmem:[%s355_s17] sm:$0xff]  ;;  %v1637_v16 = vld [vmem:[%s2059_s20 + $0x10] sm:$0xf]  ;;  %v1947_v17 = vld [vmem:[%s2059_s20 + $0x14] sm:$0xf0]  ;;  %v1642_v18 = vor.u32 %v1946_v10, %v1639_v11 }
  0x11   : > { %395 = vmatpush.msra.mxu1 %v376_v3  ;;  %v1944_v19 = vld [vmem:[%s2059_s20 + $0x4] sm:$0xf]  ;;  %v1631_v20 = vld [vmem:[%s2059_s20 + $0x8] sm:$0xf0]  ;;  %v1638_v21 = vor.u32 %v1947_v17, %v1637_v16  ;;  %v1629_v22 = vld [vmem:[%s2059_s20] sm:$0xf] }
  0x12   : > { %v428_v9 = vpack.c.b16 %v422_v6, %v422_v6  ;;  %v427_v12 = vpack.c.b16 %v421_v7, %v421_v7  ;;  %v1945_v23 = vld [vmem:[%s2059_s20 + $0x4] sm:$0xf0]  ;;  %v1634_v24 = vor.u32 %v1944_v19, %v1631_v20  ;;  %v771_v28 = vld [vmem:[%s3070_s6] sm:$0xff] }
  0x13   : > { %396 = vmatpush.msra.mxu1 %v375_v5  ;;  %v1630_v25 = vor.u32 %v1945_v23, %v1629_v22  ;;  %v801_v40 = vld [vmem:[%s3071_s7 + $0xe0] sm:$0xff] }
  0x14   : > { %v442_v14 = vsel %vm437_vm0, %v428_v9, 0  ;;  %v439_v15 = vsel %vm437_vm0, %v427_v12, 0 }
  0x15   : > { %397 = vmatpush.msra.mxu1 %v374_v8  ;;  %462 = vmatpush.bf16.msra.mxu2 %v442_v14 }
  0x16   : > { %1626 = vmatmul.msk.f32.vlgmr.msra.gmra.mxu1 %vm378_vm1, %v373_v13  ;;  %1962 = vset.pattern.permute.xlu2 %v1984_v41  ;;  %v561_v41 = vld [vmem:[%s3069_s5 + $0x28] sm:$0xff] }
  0x17   : > { %449 = vmatpush.bf16.msrb.mxu1 %v439_v15  ;;  %509 = vperm.xlu2 %1962, %v2046_v0  }
  0x19   : > { %463 = vmatpush.bf16.msra.mxu2 %v1642_v18 }
  0x1b   : > { %450 = vmatpush.bf16.msrb.mxu1 %v1638_v21 }
  0x1d   : > { %464 = vmatpush.bf16.msra.mxu2 %v1634_v24 }
  0x1f   : > { %451 = vmatpush.bf16.msrb.mxu1 %v1630_v25 }
  0x20   : > { %1644 = vmatmul.msk.bf16.vlgmr.msra.gmra.mxu2 %vm433_vm2, %v367_v26 }
  0x22   : > { %1643 = vmatmul.msk.bf16.vlgmr.msrb.gmra.mxu1 %vm433_vm2, %v367_v26 }
  0x68   : > { %v504_v55 = vpop.permute.xlu2 %503 }
  0x71   : > { %v510_v62 = vpop.permute.xlu2 %509 }
  0x7f   : > { %v406_v33 = vpop.permute.xlu0 %405 }
  0x93   : > { %v399_v27 = vpop.f32.mrf.mxu1 }
  0x94   : > { %472 = vperm.xlu0 %1960, %v399_v27  }
  0x9c   : > { %853 = vperm.xlu0 %1960, %v771_v28  }
  0x9f   : > { %v453_v29 = vpop.f32.mrf.mxu1 }
  0xa0   : > { %v454_v34 = vadd.f32 %v453_v29, %v406_v33 }
  0xa3   : > { %v466_v30 = vpop.f32.mrf.mxu2 }
  0xa4   : > { %v467_v35 = vadd.f32 %v466_v30, %v406_v33  ;;  %v556_v30 = vld [vmem:[%s3069_s5] sm:$0xff]  ;;  %v558_v33 = vld [vmem:[%s3069_s5 + $0x10] sm:$0xff] }
  0xa7   : > { %v455_v31 = vpop.f32.mrf.mxu1 }
  0xab   : > { %v468_v32 = vpop.f32.mrf.mxu2 }
  0xac   : > { %v557_v32 = vld [vmem:[%s3069_s5 + $0x8] sm:$0xff] }
 0x106   : > { %v473_v36 = vpop.permute.xlu0 %472 }
 0x107   : > { %v475_v37 = vadd.f32 %v473_v36, %v454_v34  ;;  %v476_v38 = vadd.f32 %v473_v36, %v467_v35  ;;  %v559_v34 = vld [vmem:[%s3069_s5 + $0x18] sm:$0xff]  ;;  %v560_v35 = vld [vmem:[%s3069_s5 + $0x20] sm:$0xff] }
 0x108   : > { %v804_v36 = vld [vmem:[%s3071_s7 + $0xf8] sm:$0xff] }
 0x109   : > { %v477_v39 = vadd.f32 %v476_v38, %v475_v37  ;;  %828 = vmatpush.msrb.mxu2 %v804_v36  ;;  %v1704_v36 = vld [vmem:[%s3071_s7 + $0x1a8] sm:$0xff] }
 0x10b   : > { %478 = vadd.xlane.f32.xlu1 %v477_v39  ;;  %v802_v39 = vld [vmem:[%s3071_s7 + $0xe8] sm:$0xff] }
 0x17e   : > { %v479_v42 = vpop.xlane.xlu1 %478 }
 0x17f   : > { %v480_v43 = vmul.f32 0.00390625, %v479_v42  ;;  %v787_v42 = vld [vmem:[%s3071_s7 + $0x70] sm:$0xff] }
 0x181   : > { %v481_v44 = vsub.f32 %v475_v37, %v480_v43  ;;  %v482_v45 = vsub.f32 %v476_v38, %v480_v43  ;;  %v803_v37 = vld [vmem:[%s3071_s7 + $0xf0] sm:$0xff]  ;;  %v788_v38 = vld [vmem:[%s3071_s7 + $0x78] sm:$0xff] }
 0x182   : > { %805 = vmatpush.msra.mxu1 %v788_v38  ;;  %829 = vmatpush.msrb.mxu2 %v803_v37  ;;  %v800_v43 = vld [vmem:[%s3071_s7 + $0xd8] sm:$0xff] }
 0x183   : > { %v483_v46 = vmul.f32 %v481_v44, %v481_v44  ;;  %v484_v47 = vmul.f32 %v482_v45, %v482_v45  ;;  %v1690_v37 = vld [vmem:[%s3071_s7 + $0x138] sm:$0xff] }
 0x184   : > { %830 = vmatpush.msrb.mxu2 %v802_v39  ;;  %806 = vmatpush.msra.mxu1 %v787_v42  ;;  %v567_v38 = vld [vmem:[%s3069_s5 + $0x58] sm:$0xff]  ;;  %v1703_v39 = vld [vmem:[%s3071_s7 + $0x1a0] sm:$0xff] }
 0x185   : > { %v485_v48 = vadd.f32 %v484_v47, %v483_v46  ;;  %v785_v46 = vld [vmem:[%s3071_s7 + $0x60] sm:$0xff]  ;;  %v798_v47 = vld [vmem:[%s3071_s7 + $0xc8] sm:$0xff]  ;;  %v1790_v42 = vld [vmem:[%s3071_s7 + $0x458] sm:$0xff] }
 0x186   : > { %831 = vmatpush.msrb.mxu2 %v801_v40  ;;  %v1689_v40 = vld [vmem:[%s3071_s7 + $0x130] sm:$0xff] }
 0x187   : > { %486 = vadd.xlane.f32.xlu1 %v485_v48  ;;  %v784_v48 = vld [vmem:[%s3071_s7 + $0x58] sm:$0xff] }
 0x188   : > { %832 = vmatpush.msrb.mxu2 %v800_v43  ;;  %v1688_v43 = vld [vmem:[%s3071_s7 + $0x128] sm:$0xff] }
 0x1fa   : > { %v487_v49 = vpop.xlane.xlu1 %486 }
 0x1fb   : > { %v488_v50 = vmul.f32 0.00390625, %v487_v49  ;;  %v562_v49 = vld [vmem:[%s3069_s5 + $0x30] sm:$0xff] }
 0x1fd   : > { %v489_v51 = vadd.f32 1e-05, %v488_v50  ;;  %v797_v50 = vld [vmem:[%s3071_s7 + $0xc0] sm:$0xff] }
 0x1ff   : > { %1964 = vrsqrt.f32 %v489_v51  ;;  %vm496_vm4 = vweird.f32 %v489_v51 }
 0x205   : > { %v1965_v52 = vpop.eup %1964 }
 0x206   : > { %v491_v53 = vmul.f32 %v1965_v52, %v489_v51  ;;  %vm497_vm3 = vweird.f32 %v1965_v52  ;;  %v783_v51 = vld [vmem:[%s3071_s7 + $0x50] sm:$0xff] }
 0x207   : > { %vm498_vm5 = vmor %vm496_vm4, %vm497_vm3 }
 0x208   : > { %v492_v54 = vmul.f32 %v1965_v52, %v491_v53  ;;  %v782_v53 = vld [vmem:[%s3071_s7 + $0x48] sm:$0xff] }
 0x20a   : > { %v493_v56 = vmul.f32 0.5, %v492_v54  ;;  %v795_v54 = vld [vmem:[%s3071_s7 + $0xb0] sm:$0xff] }
 0x20c   : > { %v494_v57 = vsub.f32 1.5, %v493_v56  ;;  %v1794_v56 = vld [vmem:[%s3071_s7 + $0x478] sm:$0xff] }
 0x20e   : > { %v495_v58 = vmul.f32 %v1965_v52, %v494_v57  ;;  %v794_v57 = vld [vmem:[%s3071_s7 + $0xa8] sm:$0xff] }
 0x210   : > { %v499_v59 = vsel %vm498_vm5, %v1965_v52, %v495_v58  ;;  %v796_v52 = vld [vmem:[%s3071_s7 + $0xb8] sm:$0xff] }
 0x211   : > { %v500_v60 = vmul.f32 %v499_v59, %v481_v44  ;;  %v501_v61 = vmul.f32 %v499_v59, %v482_v45  ;;  %v786_v44 = vld [vmem:[%s3071_s7 + $0x68] sm:$0xff]  ;;  %v799_v45 = vld [vmem:[%s3071_s7 + $0xd0] sm:$0xff]  ;;  %v780_v58 = vld [vmem:[%s3071_s7 + $0x38] sm:$0xff] }
 0x212   : > { %807 = vmatpush.msra.mxu1 %v786_v44  ;;  %833 = vmatpush.msrb.mxu2 %v799_v45  ;;  %v563_v59 = vld [vmem:[%s3069_s5 + $0x38] sm:$0xff]  ;;  %v1701_v44 = vld [vmem:[%s3071_s7 + $0x190] sm:$0xff]  ;;  %v1687_v45 = vld [vmem:[%s3071_s7 + $0x120] sm:$0xff] }
 0x213   : > { %v506_v63 = vmul.f32 %v504_v55, %v500_v60  ;;  %v507_v0 = vmul.f32 %v504_v55, %v501_v61  ;;  %v781_v55 = vld [vmem:[%s3071_s7 + $0x40] sm:$0xff]  ;;  %v779_v61 = vld [vmem:[%s3071_s7 + $0x30] sm:$0xff] }
 0x214   : > { %808 = vmatpush.msra.mxu1 %v785_v46  ;;  %834 = vmatpush.msrb.mxu2 %v798_v47  ;;  %v793_v60 = vld [vmem:[%s3071_s7 + $0xa0] sm:$0xff]  ;;  %v1700_v46 = vld [vmem:[%s3071_s7 + $0x188] sm:$0xff] }
 0x215   : > { %v512_v1 = vadd.f32 %v510_v62, %v506_v63  ;;  %v513_v2 = vadd.f32 %v510_v62, %v507_v0  ;;  %v792_v62 = vld [vmem:[%s3071_s7 + $0x98] sm:$0xff]  ;;  %v778_v63 = vld [vmem:[%s3071_s7 + $0x28] sm:$0xff]  ;;  %v791_v0 = vld [vmem:[%s3071_s7 + $0x90] sm:$0xff] }
 0x216   : > { %809 = vmatpush.msra.mxu1 %v784_v48  ;;  %835 = vmatpush.msrb.mxu2 %v797_v50  ;;  %v568_v47 = vld [vmem:[%s3069_s5 + $0x60] sm:$0xff]  ;;  %v1686_v48 = vld [vmem:[%s3071_s7 + $0x118] sm:$0xff] }
 0x217   : > { %v1645_v3 = vmul.f32 -1.442695, %v512_v1  ;;  %v1646_v4 = vmul.f32 -1.442695, %v513_v2  ;;  %v1806_v50 = vld [vmem:[%s3071_s7 + $0x4d8] sm:$0xff] }
 0x218   : > { %810 = vmatpush.msra.mxu1 %v783_v51  ;;  %836 = vmatpush.msrb.mxu2 %v796_v52  ;;  %v1685_v51 = vld [vmem:[%s3071_s7 + $0x110] sm:$0xff]  ;;  %v1684_v52 = vld [vmem:[%s3071_s7 + $0x108] sm:$0xff] }
 0x219   : > { %1966 = vpow2.f32 %v1645_v3  ;;  %v1793_v3 = vld [vmem:[%s3071_s7 + $0x470] sm:$0xff] }
 0x21a   : > { %1968 = vpow2.f32 %v1646_v4  ;;  %811 = vmatpush.msra.mxu1 %v782_v53  ;;  %837 = vmatpush.msrb.mxu2 %v795_v54  ;;  %v790_v4 = vld [vmem:[%s3071_s7 + $0x88] sm:$0xff]  ;;  %v1789_v53 = vld [vmem:[%s3071_s7 + $0x450] sm:$0xff]  ;;  %v1683_v54 = vld [vmem:[%s3071_s7 + $0x100] sm:$0xff] }
 0x21c   : > { %812 = vmatpush.msra.mxu1 %v781_v55  ;;  %838 = vmatpush.msrb.mxu2 %v794_v57  ;;  %v569_v55 = vld [vmem:[%s3069_s5 + $0x68] sm:$0xff] }
 0x21d   : > { %v1788_v57 = vld [vmem:[%s3071_s7 + $0x448] sm:$0xff] }
 0x21e   : > { %813 = vmatpush.msra.mxu1 %v780_v58  ;;  %839 = vmatpush.msrb.mxu2 %v793_v60  ;;  %v570_v58 = vld [vmem:[%s3069_s5 + $0x70] sm:$0xff]  ;;  %v1787_v60 = vld [vmem:[%s3071_s7 + $0x440] sm:$0xff] }
 0x21f   : > { %v1967_v5 = vpop.eup %1966 }
 0x220   : > { %v1969_v6 = vpop.eup %1968  ;;  %v520_v7 = vadd.f32 1.0, %v1967_v5  ;;  %814 = vmatpush.msra.mxu1 %v779_v61  ;;  %840 = vmatpush.msrb.mxu2 %v792_v62  ;;  %v776_v5 = vld [vmem:[%s3071_s7 + $0x18] sm:$0xff]  ;;  %v772_v62 = vld [vmem:[%s3070_s6 + $0x8] sm:$0xff] }
 0x221   : > { %v521_v8 = vadd.f32 1.0, %v1969_v6  ;;  %v564_v6 = vld [vmem:[%s3069_s5 + $0x40] sm:$0xff]  ;;  %v571_v61 = vld [vmem:[%s3069_s5 + $0x78] sm:$0xff]  ;;  %858 = vperm.xlu1 %1963, %v772_v62   ;;  %v1760_v62 = vld [vmem:[%s3071_s7 + $0x368] sm:$0xff] }
 0x222   : > { %1970 = vrcp.f32 %v520_v7  ;;  %v533_v14 = vand.u32 2147483648, %v520_v7  ;;  %v531_v17 = vand.u32 2147483647, %v520_v7  ;;  %vm527_vm8 = vweird.f32 %v520_v7  ;;  %815 = vmatpush.msra.mxu1 %v778_v63  ;;  %841 = vmatpush.msrb.mxu2 %v791_v0  ;;  %v1803_v63 = vld [vmem:[%s3071_s7 + $0x4c0] sm:$0xff]  ;;  %v1746_v0 = vld [vmem:[%s3071_s7 + $0x2f8] sm:$0xff] }
 0x223   : > { %1972 = vrcp.f32 %v521_v8  ;;  %v548_v18 = vand.u32 2147483648, %v521_v8  ;;  %v546_v20 = vand.u32 2147483647, %v521_v8  ;;  %vm542_vm10 = vweird.f32 %v521_v8 }
 0x224   : > { %v534_v22 = vor.u32 1.1754944e-38, %v533_v14  ;;  %vm532_vm11 = vcmp.eq.f32.partialorder %v531_v17, 8.507059e+37  ;;  %842 = vmatpush.msrb.mxu2 %v790_v4  ;;  %v1792_v14 = vld [vmem:[%s3071_s7 + $0x468] sm:$0xff]  ;;  %v1711_v17 = vld [vmem:[%s3071_s7 + $0x1e0] sm:$0xff]  ;;  %v1745_v4 = vld [vmem:[%s3071_s7 + $0x2f0] sm:$0xff] }
 0x225   : > { %v549_v25 = vor.u32 1.1754944e-38, %v548_v18  ;;  %vm547_vm13 = vcmp.eq.f32.partialorder %v546_v20, 8.507059e+37  ;;  %v565_v18 = vld [vmem:[%s3069_s5 + $0x48] sm:$0xff]  ;;  %v1710_v20 = vld [vmem:[%s3071_s7 + $0x1d8] sm:$0xff] }
 0x228   : > { %v1971_v9 = vpop.eup %1970 }
 0x229   : > { %v1973_v10 = vpop.eup %1972  ;;  %v523_v11 = vmul.f32 %v1971_v9, %v520_v7  ;;  %vm528_vm6 = vweird.f32 %v1971_v9  ;;  %v789_v7 = vld [vmem:[%s3071_s7 + $0x80] sm:$0xff] }
 0x22a   : > { %v538_v12 = vmul.f32 %v1973_v10, %v521_v8  ;;  %vm543_vm7 = vweird.f32 %v1973_v10  ;;  %vm529_vm9 = vmor %vm527_vm8, %vm528_vm6  ;;  %v1714_v8 = vld [vmem:[%s3071_s7 + $0x1f8] sm:$0xff]  ;;  %843 = vmatpush.msrb.mxu2 %v789_v7 }
 0x22b   : > { %v524_v13 = vsub.f32 1.0, %v523_v11  ;;  %vm544_vm12 = vmor %vm542_vm10, %vm543_vm7  ;;  %v774_v11 = vld [vmem:[%s3071_s7 + $0x8] sm:$0xff] }
 0x22c   : > { %v539_v15 = vsub.f32 1.0, %v538_v12  ;;  %919 = vmatpush.msra.mxu2 %v1714_v8  ;;  %v1809_v12 = vld [vmem:[%s3071_s7 + $0x4f0] sm:$0xff]  ;;  %v1743_v8 = vld [vmem:[%s3071_s7 + $0x2e0] sm:$0xff] }
 0x22d   : > { %v525_v16 = vmul.f32 %v1971_v9, %v524_v13  ;;  %v1712_v13 = vld [vmem:[%s3071_s7 + $0x1e8] sm:$0xff] }
 0x22e   : > { %v540_v19 = vmul.f32 %v1973_v10, %v539_v15  ;;  %v773_v15 = vld [vmem:[%s3071_s7] sm:$0xff] }
 0x22f   : > { %v526_v21 = vadd.f32 %v1971_v9, %v525_v16  ;;  %v1698_v16 = vld [vmem:[%s3071_s7 + $0x178] sm:$0xff] }
 0x230   : > { %v541_v23 = vadd.f32 %v1973_v10, %v540_v19  ;;  %v1697_v19 = vld [vmem:[%s3071_s7 + $0x170] sm:$0xff] }
 0x231   : > { %v530_v24 = vsel %vm529_vm9, %v1971_v9, %v526_v21  ;;  %v775_v9 = vld [vmem:[%s3071_s7 + $0x10] sm:$0xff]  ;;  %v1696_v21 = vld [vmem:[%s3071_s7 + $0x168] sm:$0xff] }
 0x232   : > { %v535_v26 = vsel %vm532_vm11, %v534_v22, %v530_v24  ;;  %v545_v27 = vsel %vm544_vm12, %v1973_v10, %v541_v23  ;;  %v1713_v10 = vld [vmem:[%s3071_s7 + $0x1f0] sm:$0xff]  ;;  %v1808_v23 = vld [vmem:[%s3071_s7 + $0x4e8] sm:$0xff]  ;;  %v1695_v24 = vld [vmem:[%s3071_s7 + $0x160] sm:$0xff] }
 0x233   : > { %v552_v28 = vmul.f32 %v535_v26, %v512_v1  ;;  %v550_v29 = vsel %vm547_vm13, %v549_v25, %v545_v27  ;;  %v1810_v1 = vld [vmem:[%s3071_s7 + $0x4f8] sm:$0xff]  ;;  %920 = vmatpush.msra.mxu2 %v1713_v10  ;;  %v1709_v22 = vld [vmem:[%s3071_s7 + $0x1d0] sm:$0xff]  ;;  %v1708_v25 = vld [vmem:[%s3071_s7 + $0x1c8] sm:$0xff] }
 0x234   : > { %v553_v31 = vmul.f32 %v550_v29, %v513_v2  ;;  %v777_v2 = vld [vmem:[%s3071_s7 + $0x20] sm:$0xff]  ;;  %v1694_v27 = vld [vmem:[%s3071_s7 + $0x158] sm:$0xff]  ;;  %v1729_v10 = vld [vmem:[%s3071_s7 + $0x270] sm:$0xff] }
 0x235   : > { %554 = vst [vmem:[%s360_s11] sm:$0xff] %v552_v28  ;;  %644 = vmatpush.msra.mxu3 %v552_v28  ;;  %816 = vmatpush.msra.mxu1 %v777_v2  ;;  %v1791_v26 = vld [vmem:[%s3071_s7 + $0x460] sm:$0xff]  ;;  %v566_v28 = vld [vmem:[%s3069_s5 + $0x50] sm:$0xff] }
 0x236   : > { %555 = vst [vmem:[%s360_s11 + $0x8] sm:$0xff] %v553_v31  ;;  %715 = vmatpush.msra.mxu0 %v553_v31  ;;  %1647 = vmatmul.msk.f32.vlgmr.msra.gmra.mxu3 %vm574_vm14, %v556_v30  ;;  %v1707_v29 = vld [vmem:[%s3071_s7 + $0x1c0] sm:$0xff]  ;;  %v1706_v31 = vld [vmem:[%s3071_s7 + $0x1b8] sm:$0xff] }
 0x237   : > { %1665 = vmatmul.msk.f32.vlgmr.msra.gmra.mxu0 %vm574_vm14, %v556_v30  ;;  %1139 = vmatpush.msrb.mxu3 %v1794_v56  ;;  %v1693_v30 = vld [vmem:[%s3071_s7 + $0x150] sm:$0xff] }
 0x238   : > { %1162 = vmatpush.msrb.mxu0 %v1810_v1  ;;  %817 = vmatpush.msra.mxu1 %v776_v5  ;;  %v1805_v56 = vld [vmem:[%s3071_s7 + $0x4d0] sm:$0xff]  ;;  %v572_v1 = vld [vmem:[%s3069_s5 + $0x80] sm:$0xff]  ;;  %v1744_v5 = vld [vmem:[%s3071_s7 + $0x2e8] sm:$0xff] }
 0x239   : > { %1140 = vmatpush.msrb.mxu3 %v1793_v3  ;;  %921 = vmatpush.msra.mxu2 %v1712_v13  ;;  %v1786_v3 = vld [vmem:[%s3071_s7 + $0x438] sm:$0xff] }
 0x23a   : > { %818 = vmatpush.msra.mxu1 %v775_v9  ;;  %1163 = vmatpush.msrb.mxu0 %v1809_v12  ;;  %v1802_v9 = vld [vmem:[%s3071_s7 + $0x4b8] sm:$0xff]  ;;  %v573_v12 = vld [vmem:[%s3069_s5 + $0x88] sm:$0xff] }
 0x23b   : > { %1141 = vmatpush.msrb.mxu3 %v1792_v14  ;;  %922 = vmatpush.msra.mxu2 %v1711_v17  ;;  %v1728_v14 = vld [vmem:[%s3071_s7 + $0x268] sm:$0xff]  ;;  %v1727_v17 = vld [vmem:[%s3071_s7 + $0x260] sm:$0xff] }
 0x23c   : > { %819 = vmatpush.msra.mxu1 %v774_v11  ;;  %1164 = vmatpush.msrb.mxu0 %v1808_v23  ;;  %v1742_v11 = vld [vmem:[%s3071_s7 + $0x2d8] sm:$0xff] }
 0x23d   : > { %923 = vmatpush.msra.mxu2 %v1710_v20  ;;  %1142 = vmatpush.msrb.mxu3 %v1791_v26  ;;  %v1738_v23 = vld [vmem:[%s3071_s7 + $0x2b8] sm:$0xff]  ;;  %v1724_v26 = vld [vmem:[%s3071_s7 + $0x248] sm:$0xff] }
 0x23e   : > { %1648 = vmatmul.msk.f32.gmra.mxu3 %vm574_vm14, %v557_v32  ;;  %820 = vmatpush.msra.mxu1 %v773_v15  ;;  %v1741_v15 = vld [vmem:[%s3071_s7 + $0x2d0] sm:$0xff] }
 0x23f   : > { %1666 = vmatmul.msk.f32.gmra.mxu0 %vm574_vm14, %v557_v32  ;;  %924 = vmatpush.msra.mxu2 %v1709_v22  ;;  %v1692_v32 = vld [vmem:[%s3071_s7 + $0x148] sm:$0xff]  ;;  %v1725_v22 = vld [vmem:[%s3071_s7 + $0x250] sm:$0xff] }
 0x240   : > { %896 = vmatpush.msrb.mxu1 %v1698_v16  ;;  %1143 = vmatpush.msrb.mxu3 %v1790_v42  ;;  %v1785_v16 = vld [vmem:[%s3071_s7 + $0x430] sm:$0xff]  ;;  %v1783_v42 = vld [vmem:[%s3071_s7 + $0x420] sm:$0xff] }
 0x241   : > { %925 = vmatpush.msra.mxu2 %v1708_v25 }
 0x242   : > { %897 = vmatpush.msrb.mxu1 %v1697_v19  ;;  %1144 = vmatpush.msrb.mxu3 %v1789_v53  ;;  %v1726_v19 = vld [vmem:[%s3071_s7 + $0x258] sm:$0xff]  ;;  %v1776_v53 = vld [vmem:[%s3071_s7 + $0x3e8] sm:$0xff] }
 0x243   : > { %926 = vmatpush.msra.mxu2 %v1707_v29  ;;  %v1723_v29 = vld [vmem:[%s3071_s7 + $0x240] sm:$0xff] }
 0x244   : > { %898 = vmatpush.msrb.mxu1 %v1696_v21  ;;  %1145 = vmatpush.msrb.mxu3 %v1788_v57  ;;  %v1739_v21 = vld [vmem:[%s3071_s7 + $0x2c0] sm:$0xff] }
 0x245   : > { %927 = vmatpush.msra.mxu2 %v1706_v31  ;;  %v1722_v31 = vld [vmem:[%s3071_s7 + $0x238] sm:$0xff]  ;;  %v1775_v57 = vld [vmem:[%s3071_s7 + $0x3e0] sm:$0xff] }
 0x246   : > { %1649 = vmatmul.msk.f32.gmra.mxu3 %vm574_vm14, %v558_v33  ;;  %899 = vmatpush.msrb.mxu1 %v1695_v24  ;;  %v1801_v24 = vld [vmem:[%s3071_s7 + $0x4b0] sm:$0xff] }
 0x247   : > { %1667 = vmatmul.msk.f32.gmra.mxu0 %vm574_vm14, %v558_v33  ;;  %v1705_v33 = vld [vmem:[%s3071_s7 + $0x1b0] sm:$0xff]  ;;  %1146 = vmatpush.msrb.mxu3 %v1787_v60  ;;  %v1780_v60 = vld [vmem:[%s3071_s7 + $0x408] sm:$0xff] }
 0x248   : > { %900 = vmatpush.msrb.mxu1 %v1694_v27  ;;  %928 = vmatpush.msra.mxu2 %v1705_v33  ;;  %v1737_v27 = vld [vmem:[%s3071_s7 + $0x2b0] sm:$0xff]  ;;  %v1735_v33 = vld [vmem:[%s3071_s7 + $0x2a0] sm:$0xff] }
 0x249   : > { %1147 = vmatpush.msrb.mxu3 %v1786_v3  ;;  %v1759_v3 = vld [vmem:[%s3071_s7 + $0x360] sm:$0xff] }
 0x24a   : > { %901 = vmatpush.msrb.mxu1 %v1693_v30  ;;  %929 = vmatpush.msra.mxu2 %v1704_v36  ;;  %v1736_v30 = vld [vmem:[%s3071_s7 + $0x2a8] sm:$0xff] }
 0x24b   : > { %1148 = vmatpush.msrb.mxu3 %v1785_v16  ;;  %v1800_v36 = vld [vmem:[%s3071_s7 + $0x4a8] sm:$0xff] }
 0x24c   : > { %902 = vmatpush.msrb.mxu1 %v1692_v32  ;;  %930 = vmatpush.msra.mxu2 %v1703_v39  ;;  %v1733_v39 = vld [vmem:[%s3071_s7 + $0x290] sm:$0xff]  ;;  %v1756_v16 = vld [vmem:[%s3071_s7 + $0x348] sm:$0xff] }
 0x24e   : > { %1650 = vmatmul.msk.f32.gmra.mxu3 %vm574_vm14, %v559_v34 }
 0x24f   : > { %1668 = vmatmul.msk.f32.gmra.mxu0 %vm574_vm14, %v559_v34  ;;  %v1691_v34 = vld [vmem:[%s3071_s7 + $0x140] sm:$0xff] }
 0x250   : > { %903 = vmatpush.msrb.mxu1 %v1691_v34  ;;  %v1721_v34 = vld [vmem:[%s3071_s7 + $0x230] sm:$0xff] }
 0x252   : > { %904 = vmatpush.msrb.mxu1 %v1690_v37 }
 0x254   : > { %905 = vmatpush.msrb.mxu1 %v1689_v40  ;;  %v1719_v40 = vld [vmem:[%s3071_s7 + $0x220] sm:$0xff] }
 0x256   : > { %1651 = vmatmul.msk.f32.gmra.mxu3 %vm574_vm14, %v560_v35  ;;  %906 = vmatpush.msrb.mxu1 %v1688_v43  ;;  %v1718_v43 = vld [vmem:[%s3071_s7 + $0x218] sm:$0xff] }
 0x257   : > { %1669 = vmatmul.msk.f32.gmra.mxu0 %vm574_vm14, %v560_v35  ;;  %v1807_v35 = vld [vmem:[%s3071_s7 + $0x4e0] sm:$0xff] }
 0x258   : > { %1165 = vmatpush.msrb.mxu0 %v1807_v35  ;;  %907 = vmatpush.msrb.mxu1 %v1687_v45  ;;  %v1734_v35 = vld [vmem:[%s3071_s7 + $0x298] sm:$0xff]  ;;  %v1731_v45 = vld [vmem:[%s3071_s7 + $0x280] sm:$0xff] }
 0x25a   : > { %908 = vmatpush.msrb.mxu1 %v1686_v48  ;;  %1166 = vmatpush.msrb.mxu0 %v1806_v50  ;;  %v1716_v50 = vld [vmem:[%s3071_s7 + $0x208] sm:$0xff] }
 0x25c   : > { %909 = vmatpush.msrb.mxu1 %v1685_v51  ;;  %1167 = vmatpush.msrb.mxu0 %v1805_v56  ;;  %v1782_v51 = vld [vmem:[%s3071_s7 + $0x418] sm:$0xff]  ;;  %v1781_v56 = vld [vmem:[%s3071_s7 + $0x410] sm:$0xff] }
 0x25e   : > { %1652 = vmatmul.msk.f32.gmra.mxu3 %vm574_vm14, %v561_v41  ;;  %910 = vmatpush.msrb.mxu1 %v1684_v52  ;;  %v1799_v52 = vld [vmem:[%s3071_s7 + $0x4a0] sm:$0xff] }
 0x25f   : > { %1670 = vmatmul.msk.f32.gmra.mxu0 %vm574_vm14, %v561_v41  ;;  %v1702_v41 = vld [vmem:[%s3071_s7 + $0x198] sm:$0xff] }
 0x260   : > { %931 = vmatpush.msra.mxu2 %v1702_v41  ;;  %911 = vmatpush.msrb.mxu1 %v1683_v54  ;;  %v1732_v41 = vld [vmem:[%s3071_s7 + $0x288] sm:$0xff]  ;;  %v1715_v54 = vld [vmem:[%s3071_s7 + $0x200] sm:$0xff] }
 0x262   : > { %932 = vmatpush.msra.mxu2 %v1701_v44 }
 0x264   : > { %933 = vmatpush.msra.mxu2 %v1700_v46  ;;  %v1778_v46 = vld [vmem:[%s3071_s7 + $0x3f8] sm:$0xff] }
 0x266   : > { %1653 = vmatmul.msk.f32.gmra.mxu3 %vm574_vm14, %v562_v49 }
 0x267   : > { %1671 = vmatmul.msk.f32.gmra.mxu0 %vm574_vm14, %v562_v49  ;;  %v1699_v49 = vld [vmem:[%s3071_s7 + $0x180] sm:$0xff] }
 0x268   : > { %934 = vmatpush.msra.mxu2 %v1699_v49  ;;  %v1777_v49 = vld [vmem:[%s3071_s7 + $0x3f0] sm:$0xff] }
 0x26e   : > { %1654 = vmatmul.msk.f32.gmra.mxu3 %vm574_vm14, %v563_v59 }
 0x26f   : > { %1672 = vmatmul.msk.f32.gmra.mxu0 %vm574_vm14, %v563_v59  ;;  %v1804_v59 = vld [vmem:[%s3071_s7 + $0x4c8] sm:$0xff] }
 0x270   : > { %1168 = vmatpush.msrb.mxu0 %v1804_v59  ;;  %v1761_v59 = vld [vmem:[%s3071_s7 + $0x370] sm:$0xff] }
 0x272   : > { %1169 = vmatpush.msrb.mxu0 %v1803_v63  ;;  %v1779_v63 = vld [vmem:[%s3071_s7 + $0x400] sm:$0xff] }
 0x274   : > { %1170 = vmatpush.msrb.mxu0 %v1802_v9  ;;  %v1857_v9 = vld [vmem:[%s3071_s7 + $0x670] sm:$0xff] }
 0x276   : > { %1655 = vmatmul.msk.f32.gmra.mxu3 %vm574_vm14, %v564_v6  ;;  %1171 = vmatpush.msrb.mxu0 %v1801_v24  ;;  %v1854_v24 = vld [vmem:[%s3071_s7 + $0x658] sm:$0xff] }
 0x277   : > { %1673 = vmatmul.msk.f32.gmra.mxu0 %vm574_vm14, %v564_v6  ;;  %v1730_v6 = vld [vmem:[%s3071_s7 + $0x278] sm:$0xff] }
 0x278   : > { %1172 = vmatpush.msrb.mxu0 %v1800_v36  ;;  %v1765_v36 = vld [vmem:[%s3071_s7 + $0x390] sm:$0xff] }
 0x27a   : > { %1173 = vmatpush.msrb.mxu0 %v1799_v52  ;;  %v1841_v52 = vld [vmem:[%s3071_s7 + $0x5f0] sm:$0xff] }
 0x27e   : > { %1656 = vmatmul.msk.f32.gmra.mxu3 %vm574_vm14, %v565_v18 }
 0x27f   : > { %1674 = vmatmul.msk.f32.gmra.mxu0 %vm574_vm14, %v565_v18  ;;  %v1740_v18 = vld [vmem:[%s3071_s7 + $0x2c8] sm:$0xff] }
 0x286   : > { %1657 = vmatmul.msk.f32.gmra.mxu3 %vm574_vm14, %v566_v28 }
 0x287   : > { %1675 = vmatmul.msk.f32.gmra.mxu0 %vm574_vm14, %v566_v28  ;;  %v1784_v28 = vld [vmem:[%s3071_s7 + $0x428] sm:$0xff] }
 0x288   : > { %1149 = vmatpush.msrb.mxu3 %v1784_v28  ;;  %v1853_v28 = vld [vmem:[%s3071_s7 + $0x650] sm:$0xff] }
 0x28a   : > { %1150 = vmatpush.msrb.mxu3 %v1783_v42  ;;  %v1850_v42 = vld [vmem:[%s3071_s7 + $0x638] sm:$0xff] }
 0x28c   : > { %1151 = vmatpush.msrb.mxu3 %v1782_v51  ;;  %v1848_v51 = vld [vmem:[%s3071_s7 + $0x628] sm:$0xff] }
 0x28e   : > { %1658 = vmatmul.msk.f32.gmra.mxu3 %vm574_vm14, %v567_v38 }
 0x28f   : > { %1676 = vmatmul.msk.f32.gmra.mxu0 %vm574_vm14, %v567_v38  ;;  %v1720_v38 = vld [vmem:[%s3071_s7 + $0x228] sm:$0xff]  ;;  %1152 = vmatpush.msrb.mxu3 %v1781_v56  ;;  %v1847_v56 = vld [vmem:[%s3071_s7 + $0x620] sm:$0xff] }
 0x291   : > { %1153 = vmatpush.msrb.mxu3 %v1780_v60  ;;  %v1866_v60 = vld [vmem:[%s3071_s7 + $0x6b8] sm:$0xff] }
 0x293   : > { %1154 = vmatpush.msrb.mxu3 %v1779_v63  ;;  %v1838_v63 = vld [vmem:[%s3071_s7 + $0x5d8] sm:$0xff] }
 0x296   : > { %1659 = vmatmul.msk.f32.gmra.mxu3 %vm574_vm14, %v568_v47 }
 0x297   : > { %1677 = vmatmul.msk.f32.gmra.mxu0 %vm574_vm14, %v568_v47  ;;  %v1717_v47 = vld [vmem:[%s3071_s7 + $0x210] sm:$0xff] }
 0x29e   : > { %1660 = vmatmul.msk.f32.gmra.mxu3 %vm574_vm14, %v569_v55 }
 0x29f   : > { %1678 = vmatmul.msk.f32.gmra.mxu0 %vm574_vm14, %v569_v55  ;;  %v1762_v55 = vld [vmem:[%s3071_s7 + $0x378] sm:$0xff] }
 0x2a6   : > { %1661 = vmatmul.msk.f32.gmra.mxu3 %vm574_vm14, %v570_v58 }
 0x2a7   : > { %1679 = vmatmul.msk.f32.gmra.mxu0 %vm574_vm14, %v570_v58 }
 0x2ae   : > { %1662 = vmatmul.msk.f32.gmra.mxu3 %vm574_vm14, %v571_v61 }
 0x2af   : > { %1680 = vmatmul.msk.f32.gmra.mxu0 %vm574_vm14, %v571_v61  ;;  %v1774_v61 = vld [vmem:[%s3071_s7 + $0x3d8] sm:$0xff] }
 0x2b4   : > { %v717_v2 = vpop.f32.mrf.mxu0 }
 0x2b5   : > { %844 = vmatmul.f32.vlgmr.msrb.gmra.mxu2 %v717_v2  ;;  %v1773_v2 = vld [vmem:[%s3071_s7 + $0x3d0] sm:$0xff] }
 0x2b6   : > { %1000 = vmatpush.msrb.mxu2 %v1746_v0  ;;  %1663 = vmatmul.msk.f32.gmra.mxu3 %vm574_vm14, %v572_v1  ;;  %v1798_v0 = vld [vmem:[%s3071_s7 + $0x498] sm:$0xff] }
 0x2b7   : > { %1681 = vmatmul.msk.f32.gmra.mxu0 %vm574_vm14, %v572_v1 }
 0x2b8   : > { %1001 = vmatpush.msrb.mxu2 %v1745_v4  ;;  %1174 = vmatpush.msrb.mxu0 %v1798_v0  ;;  %v1797_v4 = vld [vmem:[%s3071_s7 + $0x490] sm:$0xff]  ;;  %v1824_v0 = vld [vmem:[%s3071_s7 + $0x568] sm:$0xff] }
 0x2b9   : > { %v646_v7 = vpop.f32.mrf.mxu3 }
 0x2ba   : > { %1002 = vmatpush.msrb.mxu2 %v1744_v5  ;;  %821 = vmatmul.f32.vlgmr.msra.gmra.mxu1 %v646_v7  ;;  %v1858_v5 = vld [vmem:[%s3071_s7 + $0x678] sm:$0xff] }
 0x2bb   : > { %977 = vmatpush.msra.mxu1 %v1730_v6  ;;  %v1772_v6 = vld [vmem:[%s3071_s7 + $0x3c8] sm:$0xff]  ;;  %v1758_v7 = vld [vmem:[%s3071_s7 + $0x358] sm:$0xff]  ;;  %1175 = vmatpush.msrb.mxu0 %v1797_v4  ;;  %v1865_v4 = vld [vmem:[%s3071_s7 + $0x6b0] sm:$0xff] }
 0x2bc   : > { %1003 = vmatpush.msrb.mxu2 %v1743_v8  ;;  %v720_v13 = vpop.f32.mrf.mxu0  ;;  %v1796_v8 = vld [vmem:[%s3071_s7 + $0x488] sm:$0xff]  ;;  %1301 = vmatpush.msra.mxu3 %v1858_v5  ;;  %v1823_v5 = vld [vmem:[%s3071_s7 + $0x560] sm:$0xff] }
 0x2bd   : > { %847 = vmatmul.f32.gmra.mxu2 %v720_v13  ;;  %978 = vmatpush.msra.mxu1 %v1729_v10  ;;  %v1771_v10 = vld [vmem:[%s3071_s7 + $0x3c0] sm:$0xff] }
 0x2be   : > { %1004 = vmatpush.msrb.mxu2 %v1742_v11  ;;  %1664 = vmatmul.msk.f32.gmra.mxu3 %vm574_vm14, %v573_v12  ;;  %v1795_v13 = vld [vmem:[%s3071_s7 + $0x480] sm:$0xff] }
 0x2bf   : > { %979 = vmatpush.msra.mxu1 %v1728_v14  ;;  %1682 = vmatmul.msk.f32.gmra.mxu0 %vm574_vm14, %v573_v12  ;;  %v1757_v12 = vld [vmem:[%s3071_s7 + $0x350] sm:$0xff]  ;;  %v1770_v14 = vld [vmem:[%s3071_s7 + $0x3b8] sm:$0xff] }
 0x2c0   : > { %1005 = vmatpush.msrb.mxu2 %v1741_v15  ;;  %1176 = vmatpush.msrb.mxu0 %v1796_v8  ;;  %v1856_v15 = vld [vmem:[%s3071_s7 + $0x668] sm:$0xff]  ;;  %v1822_v8 = vld [vmem:[%s3071_s7 + $0x558] sm:$0xff] }
 0x2c1   : > { %980 = vmatpush.msra.mxu1 %v1727_v17  ;;  %v649_v20 = vpop.f32.mrf.mxu3  ;;  %1302 = vmatpush.msra.mxu3 %v1857_v9  ;;  %v1874_v17 = vld [vmem:[%s3071_s7 + $0x6f8] sm:$0xff]  ;;  %v1835_v9 = vld [vmem:[%s3071_s7 + $0x5c0] sm:$0xff] }
 0x2c2   : > { %1006 = vmatpush.msrb.mxu2 %v1740_v18  ;;  %824 = vmatmul.f32.gmra.mxu1 %v649_v20  ;;  %v1769_v18 = vld [vmem:[%s3071_s7 + $0x3b0] sm:$0xff]  ;;  %v1855_v20 = vld [vmem:[%s3071_s7 + $0x660] sm:$0xff] }
 0x2c3   : > { %981 = vmatpush.msra.mxu1 %v1726_v19  ;;  %1177 = vmatpush.msrb.mxu0 %v1795_v13  ;;  %v1844_v13 = vld [vmem:[%s3071_s7 + $0x608] sm:$0xff] }
 0x2c4   : > { %1007 = vmatpush.msrb.mxu2 %v1739_v21  ;;  %v723_v25 = vpop.f32.mrf.mxu0  ;;  %v1755_v21 = vld [vmem:[%s3071_s7 + $0x340] sm:$0xff]  ;;  %1303 = vmatpush.msra.mxu3 %v1856_v15 }
 0x2c5   : > { %935 = vmatmul.f32.vlgmr.msra.gmra.mxu2 %v723_v25  ;;  %982 = vmatpush.msra.mxu1 %v1725_v22  ;;  %v1873_v22 = vld [vmem:[%s3071_s7 + $0x6f0] sm:$0xff]  ;;  %v1754_v25 = vld [vmem:[%s3071_s7 + $0x338] sm:$0xff]  ;;  %v1863_v15 = vld [vmem:[%s3071_s7 + $0x6a0] sm:$0xff] }
 0x2c6   : > { %1008 = vmatpush.msrb.mxu2 %v1738_v23  ;;  %v1768_v23 = vld [vmem:[%s3071_s7 + $0x3a8] sm:$0xff]  ;;  %1324 = vmatpush.msra.mxu0 %v1874_v17  ;;  %v1843_v17 = vld [vmem:[%s3071_s7 + $0x600] sm:$0xff] }
 0x2c7   : > { %983 = vmatpush.msra.mxu1 %v1724_v26  ;;  %1304 = vmatpush.msra.mxu3 %v1855_v20  ;;  %v1872_v26 = vld [vmem:[%s3071_s7 + $0x6e8] sm:$0xff]  ;;  %v1862_v20 = vld [vmem:[%s3071_s7 + $0x698] sm:$0xff] }
 0x2c8   : > { %1009 = vmatpush.msrb.mxu2 %v1737_v27  ;;  %v1767_v27 = vld [vmem:[%s3071_s7 + $0x3a0] sm:$0xff]  ;;  %1325 = vmatpush.msra.mxu0 %v1873_v22  ;;  %v1922_v22 = vld [vmem:[%s3071_s7 + $0x878] sm:$0xff] }
 0x2c9   : > { %984 = vmatpush.msra.mxu1 %v1723_v29  ;;  %v652_v32 = vpop.f32.mrf.mxu3  ;;  %1305 = vmatpush.msra.mxu3 %v1854_v24  ;;  %v1861_v24 = vld [vmem:[%s3071_s7 + $0x690] sm:$0xff] }
 0x2ca   : > { %1010 = vmatpush.msrb.mxu2 %v1736_v30  ;;  %912 = vmatmul.f32.vlgmr.msrb.gmra.mxu1 %v652_v32  ;;  %v1753_v30 = vld [vmem:[%s3071_s7 + $0x330] sm:$0xff]  ;;  %v1766_v32 = vld [vmem:[%s3071_s7 + $0x398] sm:$0xff] }
 0x2cb   : > { %985 = vmatpush.msra.mxu1 %v1722_v31  ;;  %v1871_v31 = vld [vmem:[%s3071_s7 + $0x6e0] sm:$0xff]  ;;  %1326 = vmatpush.msra.mxu0 %v1872_v26  ;;  %v1921_v26 = vld [vmem:[%s3071_s7 + $0x870] sm:$0xff] }
 0x2cc   : > { %1011 = vmatpush.msrb.mxu2 %v1735_v33  ;;  %v726_v37 = vpop.f32.mrf.mxu0  ;;  %v1852_v33 = vld [vmem:[%s3071_s7 + $0x648] sm:$0xff]  ;;  %1306 = vmatpush.msra.mxu3 %v1853_v28 }
 0x2cd   : > { %938 = vmatmul.f32.gmra.mxu2 %v726_v37  ;;  %986 = vmatpush.msra.mxu1 %v1721_v34  ;;  %v1752_v34 = vld [vmem:[%s3071_s7 + $0x328] sm:$0xff] }
 0x2ce   : > { %1012 = vmatpush.msrb.mxu2 %v1734_v35  ;;  %v1870_v35 = vld [vmem:[%s3071_s7 + $0x6d8] sm:$0xff]  ;;  %1327 = vmatpush.msra.mxu0 %v1871_v31  ;;  %v1860_v28 = vld [vmem:[%s3071_s7 + $0x688] sm:$0xff] }
 0x2cf   : > { %987 = vmatpush.msra.mxu1 %v1720_v38  ;;  %v1851_v38 = vld [vmem:[%s3071_s7 + $0x640] sm:$0xff]  ;;  %1307 = vmatpush.msra.mxu3 %v1852_v33  ;;  %v1920_v31 = vld [vmem:[%s3071_s7 + $0x868] sm:$0xff] }
 0x2d0   : > { %1013 = vmatpush.msrb.mxu2 %v1733_v39  ;;  %v1751_v39 = vld [vmem:[%s3071_s7 + $0x320] sm:$0xff]  ;;  %1328 = vmatpush.msra.mxu0 %v1870_v35 }
 0x2d1   : > { %988 = vmatpush.msra.mxu1 %v1719_v40  ;;  %v655_v44 = vpop.f32.mrf.mxu3  ;;  %v1869_v40 = vld [vmem:[%s3071_s7 + $0x6d0] sm:$0xff]  ;;  %1308 = vmatpush.msra.mxu3 %v1851_v38  ;;  %v1859_v33 = vld [vmem:[%s3071_s7 + $0x680] sm:$0xff]  ;;  %v1938_v38 = vld [vmem:[%s3071_s7 + $0x8f8] sm:$0xff] }
 0x2d2   : > { %1014 = vmatpush.msrb.mxu2 %v1732_v41  ;;  %915 = vmatmul.f32.gmra.mxu1 %v655_v44  ;;  %v1764_v41 = vld [vmem:[%s3071_s7 + $0x388] sm:$0xff]  ;;  %v1919_v35 = vld [vmem:[%s3071_s7 + $0x860] sm:$0xff] }
 0x2d3   : > { %989 = vmatpush.msra.mxu1 %v1718_v43  ;;  %v1750_v43 = vld [vmem:[%s3071_s7 + $0x318] sm:$0xff]  ;;  %v1868_v44 = vld [vmem:[%s3071_s7 + $0x6c8] sm:$0xff]  ;;  %1329 = vmatpush.msra.mxu0 %v1869_v40 }
 0x2d4   : > { %1015 = vmatpush.msrb.mxu2 %v1731_v45  ;;  %v729_v48 = vpop.f32.mrf.mxu0  ;;  %v1763_v45 = vld [vmem:[%s3071_s7 + $0x380] sm:$0xff]  ;;  %1309 = vmatpush.msra.mxu3 %v1850_v42  ;;  %v1918_v40 = vld [vmem:[%s3071_s7 + $0x858] sm:$0xff]  ;;  %v1937_v42 = vld [vmem:[%s3071_s7 + $0x8f0] sm:$0xff] }
 0x2d5   : > { %990 = vmatpush.msra.mxu1 %v1717_v47  ;;  %1016 = vmatmul.f32.vlgmr.msrb.gmra.mxu2 %v729_v48  ;;  %v1749_v48 = vld [vmem:[%s3071_s7 + $0x310] sm:$0xff] }
 0x2d6   : > { %1081 = vmatpush.msra.mxu2 %v1778_v46  ;;  %v1849_v46 = vld [vmem:[%s3071_s7 + $0x630] sm:$0xff]  ;;  %1330 = vmatpush.msra.mxu0 %v1868_v44 }
 0x2d7   : > { %991 = vmatpush.msra.mxu1 %v1716_v50  ;;  %v1748_v50 = vld [vmem:[%s3071_s7 + $0x308] sm:$0xff]  ;;  %1310 = vmatpush.msra.mxu3 %v1849_v46  ;;  %v1917_v44 = vld [vmem:[%s3071_s7 + $0x850] sm:$0xff] }
 0x2d8   : > { %1082 = vmatpush.msra.mxu2 %v1777_v49  ;;  %v1842_v49 = vld [vmem:[%s3071_s7 + $0x5f8] sm:$0xff]  ;;  %v1936_v46 = vld [vmem:[%s3071_s7 + $0x8e8] sm:$0xff] }
 0x2d9   : > { %992 = vmatpush.msra.mxu1 %v1715_v54  ;;  %v658_v58 = vpop.f32.mrf.mxu3  ;;  %v1867_v54 = vld [vmem:[%s3071_s7 + $0x6c0] sm:$0xff]  ;;  %1311 = vmatpush.msra.mxu3 %v1848_v51  ;;  %v1916_v51 = vld [vmem:[%s3071_s7 + $0x848] sm:$0xff] }
 0x2da   : > { %1083 = vmatpush.msra.mxu2 %v1776_v53  ;;  %993 = vmatmul.f32.vlgmr.msra.gmra.mxu1 %v658_v58  ;;  %v1826_v58 = vld [vmem:[%s3071_s7 + $0x578] sm:$0xff] }
 0x2db   : > { %1058 = vmatpush.msrb.mxu1 %v1762_v55  ;;  %v1747_v55 = vld [vmem:[%s3071_s7 + $0x300] sm:$0xff]  ;;  %1331 = vmatpush.msra.mxu0 %v1867_v54 }
 0x2dc   : > { %1084 = vmatpush.msra.mxu2 %v1775_v57  ;;  %v732_v1 = vpop.f32.mrf.mxu0  ;;  %v1840_v57 = vld [vmem:[%s3071_s7 + $0x5e8] sm:$0xff]  ;;  %1312 = vmatpush.msra.mxu3 %v1847_v56  ;;  %v1935_v54 = vld [vmem:[%s3071_s7 + $0x8e0] sm:$0xff] }
 0x2dd   : > { %1059 = vmatpush.msrb.mxu1 %v1761_v59  ;;  %1019 = vmatmul.f32.gmra.mxu2 %v732_v1  ;;  %v1839_v59 = vld [vmem:[%s3071_s7 + $0x5e0] sm:$0xff]  ;;  %v1846_v1 = vld [vmem:[%s3071_s7 + $0x618] sm:$0xff] }
 0x2de   : > { %1085 = vmatpush.msra.mxu2 %v1774_v61  ;;  %1332 = vmatpush.msra.mxu0 %v1866_v60  ;;  %v1915_v56 = vld [vmem:[%s3071_s7 + $0x840] sm:$0xff]  ;;  %v1934_v60 = vld [vmem:[%s3071_s7 + $0x8d8] sm:$0xff] }
 0x2df   : > { %1060 = vmatpush.msrb.mxu1 %v1760_v62  ;;  %v1825_v62 = vld [vmem:[%s3071_s7 + $0x570] sm:$0xff]  ;;  %1313 = vmatpush.msra.mxu3 %v1846_v1  ;;  %v1914_v1 = vld [vmem:[%s3071_s7 + $0x838] sm:$0xff] }
 0x2e0   : > { %1086 = vmatpush.msra.mxu2 %v1773_v2  ;;  %v1837_v2 = vld [vmem:[%s3071_s7 + $0x5d0] sm:$0xff]  ;;  %1333 = vmatpush.msra.mxu0 %v1865_v4 }
 0x2e1   : > { %1061 = vmatpush.msrb.mxu1 %v1759_v3  ;;  %v661_v11 = vpop.f32.mrf.mxu3  ;;  %v1933_v4 = vld [vmem:[%s3071_s7 + $0x8d0] sm:$0xff] }
 0x2e2   : > { %1087 = vmatpush.msra.mxu2 %v1772_v6  ;;  %996 = vmatmul.f32.gmra.mxu1 %v661_v11  ;;  %v1845_v6 = vld [vmem:[%s3071_s7 + $0x610] sm:$0xff] }
 0x2e3   : > { %1062 = vmatpush.msrb.mxu1 %v1758_v7  ;;  %v1836_v7 = vld [vmem:[%s3071_s7 + $0x5c8] sm:$0xff]  ;;  %1314 = vmatpush.msra.mxu3 %v1845_v6  ;;  %v1913_v6 = vld [vmem:[%s3071_s7 + $0x830] sm:$0xff] }
 0x2e4   : > { %1088 = vmatpush.msra.mxu2 %v1771_v10  ;;  %v2627_v19 = vpop.f32.mrf.mxu0  ;;  %v1864_v10 = vld [vmem:[%s3071_s7 + $0x6a8] sm:$0xff] }
 0x2e5   : > { %1063 = vmatpush.msrb.mxu1 %v1757_v12  ;;  %v1821_v12 = vld [vmem:[%s3071_s7 + $0x550] sm:$0xff]  ;;  %1334 = vmatpush.msra.mxu0 %v1864_v10  ;;  %v1932_v10 = vld [vmem:[%s3071_s7 + $0x8c8] sm:$0xff] }
 0x2e6   : > { %1089 = vmatpush.msra.mxu2 %v1770_v14  ;;  %v1834_v14 = vld [vmem:[%s3071_s7 + $0x5b8] sm:$0xff]  ;;  %1315 = vmatpush.msra.mxu3 %v1844_v13  ;;  %v1912_v13 = vld [vmem:[%s3071_s7 + $0x828] sm:$0xff] }
 0x2e7   : > { %1064 = vmatpush.msrb.mxu1 %v1756_v16  ;;  %v1820_v16 = vld [vmem:[%s3071_s7 + $0x548] sm:$0xff]  ;;  %1335 = vmatpush.msra.mxu0 %v1863_v15  ;;  %v1931_v15 = vld [vmem:[%s3071_s7 + $0x8c0] sm:$0xff] }
 0x2e8   : > { %1090 = vmatpush.msra.mxu2 %v1769_v18  ;;  %v1833_v18 = vld [vmem:[%s3071_s7 + $0x5b0] sm:$0xff]  ;;  %1316 = vmatpush.msra.mxu3 %v1843_v17  ;;  %v1911_v17 = vld [vmem:[%s3071_s7 + $0x820] sm:$0xff] }
 0x2e9   : > { %1065 = vmatpush.msrb.mxu1 %v1755_v21  ;;  %v2656_v29 = vpop.f32.mrf.mxu3  ;;  %v1819_v21 = vld [vmem:[%s3071_s7 + $0x540] sm:$0xff]  ;;  %1336 = vmatpush.msra.mxu0 %v1862_v20  ;;  %v1930_v20 = vld [vmem:[%s3071_s7 + $0x8b8] sm:$0xff] }
 0x2ea   : > { %1091 = vmatpush.msra.mxu2 %v1768_v23  ;;  %v1832_v23 = vld [vmem:[%s3071_s7 + $0x5a8] sm:$0xff] }
 0x2eb   : > { %1066 = vmatpush.msrb.mxu1 %v1754_v25  ;;  %v1818_v25 = vld [vmem:[%s3071_s7 + $0x538] sm:$0xff]  ;;  %1337 = vmatpush.msra.mxu0 %v1861_v24  ;;  %v1929_v24 = vld [vmem:[%s3071_s7 + $0x8b0] sm:$0xff] }
 0x2ec   : > { %1092 = vmatpush.msra.mxu2 %v1767_v27  ;;  %v738_v37 = vpop.f32.mrf.mxu0  ;;  %v1831_v27 = vld [vmem:[%s3071_s7 + $0x5a0] sm:$0xff] }
 0x2ed   : > { %1067 = vmatpush.msrb.mxu1 %v1753_v30  ;;  %v1817_v30 = vld [vmem:[%s3071_s7 + $0x530] sm:$0xff]  ;;  %1338 = vmatpush.msra.mxu0 %v1860_v28  ;;  %v1928_v28 = vld [vmem:[%s3071_s7 + $0x8a8] sm:$0xff] }
 0x2ee   : > { %1093 = vmatpush.msra.mxu2 %v1766_v32  ;;  %v1830_v32 = vld [vmem:[%s3071_s7 + $0x598] sm:$0xff] }
 0x2ef   : > { %1068 = vmatpush.msrb.mxu1 %v1752_v34  ;;  %v1816_v34 = vld [vmem:[%s3071_s7 + $0x528] sm:$0xff]  ;;  %1339 = vmatpush.msra.mxu0 %v1859_v33  ;;  %v1927_v33 = vld [vmem:[%s3071_s7 + $0x8a0] sm:$0xff] }
 0x2f0   : > { %1094 = vmatpush.msra.mxu2 %v1765_v36  ;;  %v1829_v36 = vld [vmem:[%s3071_s7 + $0x590] sm:$0xff] }
 0x2f1   : > { %1069 = vmatpush.msrb.mxu1 %v1751_v39  ;;  %v667_v47 = vpop.f32.mrf.mxu3  ;;  %v1815_v39 = vld [vmem:[%s3071_s7 + $0x520] sm:$0xff] }
 0x2f2   : > { %1095 = vmatpush.msra.mxu2 %v1764_v41  ;;  %v1828_v41 = vld [vmem:[%s3071_s7 + $0x588] sm:$0xff] }
 0x2f3   : > { %1070 = vmatpush.msrb.mxu1 %v1750_v43  ;;  %v1814_v43 = vld [vmem:[%s3071_s7 + $0x518] sm:$0xff] }
 0x2f4   : > { %1096 = vmatpush.msra.mxu2 %v1763_v45  ;;  %v741_v53 = vpop.f32.mrf.mxu0  ;;  %v1827_v45 = vld [vmem:[%s3071_s7 + $0x580] sm:$0xff] }
 0x2f5   : > { %1097 = vmatmul.f32.vlgmr.msra.gmra.mxu2 %v2627_v19  ;;  %1071 = vmatpush.msrb.mxu1 %v1749_v48  ;;  %v1813_v48 = vld [vmem:[%s3071_s7 + $0x510] sm:$0xff] }
 0x2f6   : > { %1243 = vmatpush.msrb.mxu2 %v1842_v49  ;;  %1178 = vmatmul.f32.vlgmr.msrb.gmra.mxu0 %v741_v53  ;;  %v1906_v49 = vld [vmem:[%s3071_s7 + $0x7f8] sm:$0xff] }
 0x2f7   : > { %1072 = vmatpush.msrb.mxu1 %v1748_v50  ;;  %1486 = vmatpush.msrb.mxu0 %v1938_v38  ;;  %v1812_v50 = vld [vmem:[%s3071_s7 + $0x508] sm:$0xff]  ;;  %v1926_v38 = vld [vmem:[%s3071_s7 + $0x898] sm:$0xff] }
 0x2f8   : > { %1244 = vmatpush.msrb.mxu2 %v1841_v52  ;;  %v1905_v52 = vld [vmem:[%s3071_s7 + $0x7f0] sm:$0xff] }
 0x2f9   : > { %1073 = vmatpush.msrb.mxu1 %v1747_v55  ;;  %v670_v61 = vpop.f32.mrf.mxu3  ;;  %1487 = vmatpush.msrb.mxu0 %v1937_v42  ;;  %v1811_v55 = vld [vmem:[%s3071_s7 + $0x500] sm:$0xff]  ;;  %v1878_v42 = vld [vmem:[%s3071_s7 + $0x718] sm:$0xff] }
 0x2fa   : > { %1245 = vmatpush.msrb.mxu2 %v1840_v57  ;;  %1074 = vmatmul.f32.vlgmr.msrb.gmra.mxu1 %v2656_v29  ;;  %v1904_v57 = vld [vmem:[%s3071_s7 + $0x7e8] sm:$0xff] }
 0x2fb   : > { %1220 = vmatpush.msra.mxu1 %v1826_v58  ;;  %1155 = vmatmul.f32.vlgmr.msrb.gmra.mxu3 %v670_v61  ;;  %v1890_v58 = vld [vmem:[%s3071_s7 + $0x778] sm:$0xff] }
 0x2fc   : > { %1246 = vmatpush.msrb.mxu2 %v1839_v59  ;;  %v744_v3 = vpop.f32.mrf.mxu0  ;;  %1463 = vmatpush.msrb.mxu3 %v1922_v22  ;;  %v1903_v59 = vld [vmem:[%s3071_s7 + $0x7e0] sm:$0xff]  ;;  %v1910_v22 = vld [vmem:[%s3071_s7 + $0x818] sm:$0xff] }
 0x2fd   : > { %1100 = vmatmul.f32.gmra.mxu2 %v738_v37  ;;  %1221 = vmatpush.msra.mxu1 %v1825_v62  ;;  %v1889_v62 = vld [vmem:[%s3071_s7 + $0x770] sm:$0xff] }
 0x2fe   : > { %1247 = vmatpush.msrb.mxu2 %v1838_v63  ;;  %1181 = vmatmul.f32.gmra.mxu0 %v744_v3  ;;  %v1902_v63 = vld [vmem:[%s3071_s7 + $0x7d8] sm:$0xff] }
 0x2ff   : > { %1222 = vmatpush.msra.mxu1 %v1824_v0  ;;  %1464 = vmatpush.msrb.mxu3 %v1921_v26  ;;  %v1888_v0 = vld [vmem:[%s3071_s7 + $0x768] sm:$0xff]  ;;  %v1909_v26 = vld [vmem:[%s3071_s7 + $0x810] sm:$0xff] }
 0x300   : > { %1248 = vmatpush.msrb.mxu2 %v1837_v2  ;;  %1488 = vmatpush.msrb.mxu0 %v1936_v46  ;;  %v1901_v2 = vld [vmem:[%s3071_s7 + $0x7d0] sm:$0xff] }
 0x301   : > { %1223 = vmatpush.msra.mxu1 %v1823_v5  ;;  %v673_v11 = vpop.f32.mrf.mxu3  ;;  %1465 = vmatpush.msrb.mxu3 %v1920_v31  ;;  %v1887_v5 = vld [vmem:[%s3071_s7 + $0x760] sm:$0xff]  ;;  %v1908_v31 = vld [vmem:[%s3071_s7 + $0x808] sm:$0xff]  ;;  %v1877_v46 = vld [vmem:[%s3071_s7 + $0x710] sm:$0xff] }
 0x302   : > { %1249 = vmatpush.msrb.mxu2 %v1836_v7  ;;  %1077 = vmatmul.f32.gmra.mxu1 %v667_v47  ;;  %v1900_v7 = vld [vmem:[%s3071_s7 + $0x7c8] sm:$0xff] }
 0x303   : > { %1224 = vmatpush.msra.mxu1 %v1822_v8  ;;  %1158 = vmatmul.f32.gmra.mxu3 %v673_v11  ;;  %v1886_v8 = vld [vmem:[%s3071_s7 + $0x758] sm:$0xff] }
 0x304   : > { %1250 = vmatpush.msrb.mxu2 %v1835_v9  ;;  %v2801_v19 = vpop.f32.mrf.mxu0  ;;  %1466 = vmatpush.msrb.mxu3 %v1919_v35  ;;  %v1899_v9 = vld [vmem:[%s3071_s7 + $0x7c0] sm:$0xff] }
 0x305   : > { %1225 = vmatpush.msra.mxu1 %v1821_v12  ;;  %1489 = vmatpush.msrb.mxu0 %v1935_v54  ;;  %v1885_v12 = vld [vmem:[%s3071_s7 + $0x750] sm:$0xff]  ;;  %v1907_v35 = vld [vmem:[%s3071_s7 + $0x800] sm:$0xff] }
 0x306   : > { %1251 = vmatpush.msrb.mxu2 %v1834_v14  ;;  %1467 = vmatpush.msrb.mxu3 %v1918_v40  ;;  %v1898_v14 = vld [vmem:[%s3071_s7 + $0x7b8] sm:$0xff]  ;;  %v1892_v40 = vld [vmem:[%s3071_s7 + $0x788] sm:$0xff] }
 0x307   : > { %1226 = vmatpush.msra.mxu1 %v1820_v16  ;;  %1490 = vmatpush.msrb.mxu0 %v1934_v60  ;;  %v1884_v16 = vld [vmem:[%s3071_s7 + $0x748] sm:$0xff] }
 0x308   : > { %1252 = vmatpush.msrb.mxu2 %v1833_v18  ;;  %1468 = vmatpush.msrb.mxu3 %v1917_v44  ;;  %v1897_v18 = vld [vmem:[%s3071_s7 + $0x7b0] sm:$0xff]  ;;  %v1924_v44 = vld [vmem:[%s3071_s7 + $0x888] sm:$0xff] }
 0x309   : > { %1227 = vmatpush.msra.mxu1 %v1819_v21  ;;  %v2830_v29 = vpop.f32.mrf.mxu3  ;;  %1491 = vmatpush.msrb.mxu0 %v1933_v4  ;;  %v1883_v21 = vld [vmem:[%s3071_s7 + $0x740] sm:$0xff] }
 0x30a   : > { %1253 = vmatpush.msrb.mxu2 %v1832_v23  ;;  %1469 = vmatpush.msrb.mxu3 %v1916_v51  ;;  %v1896_v23 = vld [vmem:[%s3071_s7 + $0x7a8] sm:$0xff] }
 0x30b   : > { %1228 = vmatpush.msra.mxu1 %v1818_v25  ;;  %1492 = vmatpush.msrb.mxu0 %v1932_v10  ;;  %v1882_v25 = vld [vmem:[%s3071_s7 + $0x738] sm:$0xff] }
 0x30c   : > { %1254 = vmatpush.msrb.mxu2 %v1831_v27  ;;  %v750_v37 = vpop.f32.mrf.mxu0  ;;  %1470 = vmatpush.msrb.mxu3 %v1915_v56  ;;  %v1895_v27 = vld [vmem:[%s3071_s7 + $0x7a0] sm:$0xff] }
 0x30d   : > { %1229 = vmatpush.msra.mxu1 %v1817_v30  ;;  %1493 = vmatpush.msrb.mxu0 %v1931_v15  ;;  %v1881_v30 = vld [vmem:[%s3071_s7 + $0x730] sm:$0xff] }
 0x30e   : > { %1255 = vmatpush.msrb.mxu2 %v1830_v32  ;;  %1471 = vmatpush.msrb.mxu3 %v1914_v1  ;;  %v1894_v32 = vld [vmem:[%s3071_s7 + $0x798] sm:$0xff] }
 0x30f   : > { %1230 = vmatpush.msra.mxu1 %v1816_v34  ;;  %1494 = vmatpush.msrb.mxu0 %v1930_v20  ;;  %v1880_v34 = vld [vmem:[%s3071_s7 + $0x728] sm:$0xff] }
 0x310   : > { %1256 = vmatpush.msrb.mxu2 %v1829_v36  ;;  %1472 = vmatpush.msrb.mxu3 %v1913_v6  ;;  %v1893_v36 = vld [vmem:[%s3071_s7 + $0x790] sm:$0xff] }
 0x311   : > { %1231 = vmatpush.msra.mxu1 %v1815_v39  ;;  %v679_v47 = vpop.f32.mrf.mxu3  ;;  %1495 = vmatpush.msrb.mxu0 %v1929_v24  ;;  %v1879_v39 = vld [vmem:[%s3071_s7 + $0x720] sm:$0xff] }
 0x312   : > { %1257 = vmatpush.msrb.mxu2 %v1828_v41  ;;  %1473 = vmatpush.msrb.mxu3 %v1912_v13  ;;  %v1925_v41 = vld [vmem:[%s3071_s7 + $0x890] sm:$0xff] }
 0x313   : > { %1232 = vmatpush.msra.mxu1 %v1814_v43  ;;  %1496 = vmatpush.msrb.mxu0 %v1928_v28  ;;  %v1891_v43 = vld [vmem:[%s3071_s7 + $0x780] sm:$0xff] }
 0x314   : > { %1258 = vmatpush.msrb.mxu2 %v1827_v45  ;;  %v753_v53 = vpop.f32.mrf.mxu0  ;;  %1474 = vmatpush.msrb.mxu3 %v1911_v17 }
 0x315   : > { %1259 = vmatmul.f32.vlgmr.msrb.gmra.mxu2 %v2801_v19  ;;  %1233 = vmatpush.msra.mxu1 %v1813_v48  ;;  %v1876_v48 = vld [vmem:[%s3071_s7 + $0x708] sm:$0xff] }
 0x316   : > { %1405 = vmatpush.msra.mxu2 %v1906_v49  ;;  %1340 = vmatmul.f32.vlgmr.msra.gmra.mxu0 %v753_v53 }
 0x317   : > { %1234 = vmatpush.msra.mxu1 %v1812_v50  ;;  %1475 = vmatpush.msrb.mxu3 %v1910_v22  ;;  %v1875_v50 = vld [vmem:[%s3071_s7 + $0x700] sm:$0xff] }
 0x318   : > { %1406 = vmatpush.msra.mxu2 %v1905_v52  ;;  %1497 = vmatpush.msrb.mxu0 %v1927_v33 }
 0x319   : > { %1235 = vmatpush.msra.mxu1 %v1811_v55  ;;  %v682_v61 = vpop.f32.mrf.mxu3  ;;  %1476 = vmatpush.msrb.mxu3 %v1909_v26 }
 0x31a   : > { %1407 = vmatpush.msra.mxu2 %v1904_v57  ;;  %1236 = vmatmul.f32.vlgmr.msra.gmra.mxu1 %v2830_v29 }
 0x31b   : > { %1382 = vmatpush.msrb.mxu1 %v1890_v58  ;;  %1317 = vmatmul.f32.vlgmr.msra.gmra.mxu3 %v682_v61 }
 0x31c   : > { %1408 = vmatpush.msra.mxu2 %v1903_v59  ;;  %v756_v3 = vpop.f32.mrf.mxu0  ;;  %1477 = vmatpush.msrb.mxu3 %v1908_v31 }
 0x31d   : > { %1262 = vmatmul.f32.gmra.mxu2 %v750_v37  ;;  %1383 = vmatpush.msrb.mxu1 %v1889_v62 }
 0x31e   : > { %1409 = vmatpush.msra.mxu2 %v1902_v63  ;;  %1343 = vmatmul.f32.gmra.mxu0 %v756_v3 }
 0x31f   : > { %1384 = vmatpush.msrb.mxu1 %v1888_v0  ;;  %1478 = vmatpush.msrb.mxu3 %v1907_v35 }
 0x320   : > { %1410 = vmatpush.msra.mxu2 %v1901_v2  ;;  %1498 = vmatpush.msrb.mxu0 %v1926_v38 }
 0x321   : > { %1385 = vmatpush.msrb.mxu1 %v1887_v5  ;;  %v685_v11 = vpop.f32.mrf.mxu3 }
 0x322   : > { %1411 = vmatpush.msra.mxu2 %v1900_v7  ;;  %1239 = vmatmul.f32.gmra.mxu1 %v679_v47  ;;  %v1923_v47 = vld [vmem:[%s3071_s7 + $0x880] sm:$0xff] }
 0x323   : > { %1386 = vmatpush.msrb.mxu1 %v1886_v8  ;;  %1320 = vmatmul.f32.gmra.mxu3 %v685_v11 }
 0x324   : > { %1412 = vmatpush.msra.mxu2 %v1899_v9  ;;  %v759_v19 = vpop.f32.mrf.mxu0  ;;  %1499 = vmatpush.msrb.mxu0 %v1925_v41 }
 0x325   : > { %1387 = vmatpush.msrb.mxu1 %v1885_v12 }
 0x326   : > { %1413 = vmatpush.msra.mxu2 %v1898_v14  ;;  %1500 = vmatpush.msrb.mxu0 %v1924_v44 }
 0x327   : > { %1388 = vmatpush.msrb.mxu1 %v1884_v16 }
 0x328   : > { %1414 = vmatpush.msra.mxu2 %v1897_v18  ;;  %1501 = vmatpush.msrb.mxu0 %v1923_v47  ;;  %v854_v18 = vpop.permute.xlu0 %853 }
 0x329   : > { %1389 = vmatpush.msrb.mxu1 %v1883_v21  ;;  %v688_v29 = vpop.f32.mrf.mxu3 }
 0x32a   : > { %1415 = vmatpush.msra.mxu2 %v1896_v23 }
 0x32b   : > { %1390 = vmatpush.msrb.mxu1 %v1882_v25 }
 0x32c   : > { %1416 = vmatpush.msra.mxu2 %v1895_v27  ;;  %v762_v37 = vpop.f32.mrf.mxu0  ;;  %v859_v27 = vpop.permute.xlu1 %858 }
 0x32d   : > { %1391 = vmatpush.msrb.mxu1 %v1881_v30 }
 0x32e   : > { %1417 = vmatpush.msra.mxu2 %v1894_v32 }
 0x32f   : > { %1392 = vmatpush.msrb.mxu1 %v1880_v34 }
 0x330   : > { %1418 = vmatpush.msra.mxu2 %v1893_v36 }
 0x331   : > { %1393 = vmatpush.msrb.mxu1 %v1879_v39  ;;  %v691_v45 = vpop.f32.mrf.mxu3 }
 0x332   : > { %1419 = vmatpush.msra.mxu2 %v1892_v40 }
 0x333   : > { %1394 = vmatpush.msrb.mxu1 %v1878_v42 }
 0x334   : > { %1420 = vmatpush.msra.mxu2 %v1891_v43  ;;  %v765_v49 = vpop.f32.mrf.mxu0 }
 0x335   : > { %1421 = vmatmul.f32.vlgmr.msra.gmra.mxu2 %v759_v19  ;;  %1395 = vmatpush.msrb.mxu1 %v1877_v46 }
 0x336   : > { %1502 = vmatmul.f32.vlgmr.msrb.gmra.mxu0 %v765_v49 }
 0x337   : > { %1396 = vmatpush.msrb.mxu1 %v1876_v48  ;;  %v822_v51 = vpop.f32.mrf.mxu1 }
 0x338   : > { %v845_v52 = vpop.f32.mrf.mxu2 }
 0x339   : > { %1397 = vmatpush.msrb.mxu1 %v1875_v50  ;;  %v846_v53 = vadd.f32 %v845_v52, %v822_v51  ;;  %v694_v54 = vpop.f32.mrf.mxu3 }
 0x33a   : > { %1398 = vmatmul.f32.vlgmr.msrb.gmra.mxu1 %v688_v29  ;;  %1479 = vmatmul.f32.vlgmr.msrb.gmra.mxu3 %v694_v54 }
 0x33b   : > { %v861_v20 = vadd.f32 %v854_v18, %v846_v53 }
 0x33c   : > { %v768_v55 = vpop.f32.mrf.mxu0 }
 0x33d   : > { %1424 = vmatmul.f32.gmra.mxu2 %v762_v37 }
 0x33e   : > { %1505 = vmatmul.f32.gmra.mxu0 %v768_v55 }
 0x33f   : > { %v825_v56 = vpop.f32.mrf.mxu1 }
 0x340   : > { %v848_v57 = vpop.f32.mrf.mxu2 }
 0x341   : > { %v849_v58 = vadd.f32 %v848_v57, %v825_v56  ;;  %v697_v59 = vpop.f32.mrf.mxu3 }
 0x342   : > { %1401 = vmatmul.f32.gmra.mxu1 %v691_v45  ;;  %1482 = vmatmul.f32.gmra.mxu3 %v697_v59 }
 0x343   : > { %v862_v34 = vadd.f32 %v859_v27, %v849_v58 }
 0x347   : > { %v913_v60 = vpop.f32.mrf.mxu1 }
 0x348   : > { %v936_v61 = vpop.f32.mrf.mxu2 }
 0x349   : > { %v937_v16 = vadd.f32 %v936_v61, %v913_v60 }
 0x34b   : > { %v942_v23 = vadd.f32 %v937_v16, %v861_v20 }
 0x34f   : > { %v916_v62 = vpop.f32.mrf.mxu1 }
 0x350   : > { %v939_v63 = vpop.f32.mrf.mxu2 }
 0x351   : > { %v940_v29 = vadd.f32 %v939_v63, %v916_v62 }
 0x353   : > { %v943_v39 = vadd.f32 %v940_v29, %v862_v34 }
 0x357   : > { %v994_v0 = vpop.f32.mrf.mxu1 }
 0x358   : > { %v1017_v1 = vpop.f32.mrf.mxu2 }
 0x359   : > { %v1018_v21 = vadd.f32 %v1017_v1, %v994_v0 }
 0x35b   : > { %v1023_v25 = vadd.f32 %v1018_v21, %v942_v23 }
 0x35f   : > { %v997_v2 = vpop.f32.mrf.mxu1 }
 0x360   : > { %v1020_v3 = vpop.f32.mrf.mxu2 }
 0x361   : > { %v1021_v35 = vadd.f32 %v1020_v3, %v997_v2 }
 0x363   : > { %v1024_v43 = vadd.f32 %v1021_v35, %v943_v39 }
 0x373   : > { %v1179_v6 = vpop.f32.mrf.mxu0 }
 0x377   : > { %v1075_v4 = vpop.f32.mrf.mxu1 }
 0x378   : > { %v1098_v5 = vpop.f32.mrf.mxu2 }
 0x379   : > { %v1099_v24 = vadd.f32 %v1098_v5, %v1075_v4 }
 0x37b   : > { %v1182_v10 = vpop.f32.mrf.mxu0  ;;  %v1104_v30 = vadd.f32 %v1099_v24, %v1023_v25 }
 0x37e   : > { %v1156_v7 = vpop.f32.mrf.mxu3 }
 0x37f   : > { %v1078_v8 = vpop.f32.mrf.mxu1  ;;  %v1180_v26 = vadd.f32 %v1179_v6, %v1156_v7 }
 0x380   : > { %v1101_v9 = vpop.f32.mrf.mxu2 }
 0x381   : > { %v1185_v36 = vadd.f32 %v1180_v26, %v1104_v30  ;;  %v1102_v40 = vadd.f32 %v1101_v9, %v1078_v8 }
 0x383   : > { %v1105_v47 = vadd.f32 %v1102_v40, %v1024_v43 }
 0x386   : > { %v1159_v11 = vpop.f32.mrf.mxu3 }
 0x387   : > { %v1183_v44 = vadd.f32 %v1182_v10, %v1159_v11 }
 0x389   : > { %v1186_v53 = vadd.f32 %v1183_v44, %v1105_v47 }
 0x393   : > { %v1341_v14 = vpop.f32.mrf.mxu0 }
 0x397   : > { %v1237_v12 = vpop.f32.mrf.mxu1 }
 0x398   : > { %v1260_v13 = vpop.f32.mrf.mxu2 }
 0x399   : > { %v1261_v31 = vadd.f32 %v1260_v13, %v1237_v12 }
 0x39b   : > { %v1344_v22 = vpop.f32.mrf.mxu0  ;;  %v1266_v41 = vadd.f32 %v1261_v31, %v1185_v36 }
 0x39e   : > { %v1318_v15 = vpop.f32.mrf.mxu3 }
 0x39f   : > { %v1240_v17 = vpop.f32.mrf.mxu1  ;;  %v1342_v37 = vadd.f32 %v1341_v14, %v1318_v15 }
 0x3a0   : > { %v1263_v19 = vpop.f32.mrf.mxu2 }
 0x3a1   : > { %v1347_v45 = vadd.f32 %v1342_v37, %v1266_v41  ;;  %v1264_v48 = vadd.f32 %v1263_v19, %v1240_v17 }
 0x3a3   : > { %v1267_v56 = vadd.f32 %v1264_v48, %v1186_v53 }
 0x3a6   : > { %v1321_v28 = vpop.f32.mrf.mxu3 }
 0x3a7   : > { %v1345_v54 = vadd.f32 %v1344_v22, %v1321_v28 }
 0x3a9   : > { %v1348_v59 = vadd.f32 %v1345_v54, %v1267_v56 }
 0x3b3   : > { %v1503_v38 = vpop.f32.mrf.mxu0 }
 0x3b7   : > { %v1399_v32 = vpop.f32.mrf.mxu1 }
 0x3b8   : > { %v1422_v33 = vpop.f32.mrf.mxu2 }
 0x3b9   : > { %v1423_v42 = vadd.f32 %v1422_v33, %v1399_v32 }
 0x3bb   : > { %v1428_v49 = vadd.f32 %v1423_v42, %v1347_v45  ;;  %v1506_v58 = vpop.f32.mrf.mxu0 }
 0x3bd   : > { %v1480_v46 = vpop.f32.mrf.mxu3 }
 0x3be   : > { %v1504_v50 = vadd.f32 %v1503_v38, %v1480_v46 }
 0x3bf   : > { %v1402_v51 = vpop.f32.mrf.mxu1 }
 0x3c0   : > { %v1425_v52 = vpop.f32.mrf.mxu2  ;;  %v1509_v55 = vadd.f32 %v1504_v50, %v1428_v49 }
 0x3c1   : > { %v1426_v57 = vadd.f32 %v1425_v52, %v1402_v51 }
 0x3c2   : > { %1512 = vst.msk [vmem:[%s365_s16] sm:$0xff] %vm1511_vm15, %v1509_v55 }
 0x3c3   : > { %v1429_v61 = vadd.f32 %v1426_v57, %v1348_v59 }
 0x3c5   : > { %v1483_v60 = vpop.f32.mrf.mxu3 }
 0x3c6   : > { %v1507_v62 = vadd.f32 %v1506_v58, %v1483_v60 }
 0x3c8   : > { %v1510_v63 = vadd.f32 %v1507_v62, %v1429_v61 }
 0x3ca   : > { %1513 = vst.msk [vmem:[%s365_s16 + $0x8] sm:$0xff] %vm1511_vm15, %v1510_v63 }
 0x3cb PF: > { %s20_s30 = sadd.s32 1, %s1980_s30  }
 0x3cc   : > { %p17_p4 = scmp.ge.s32.totalorder %s20_s30, 4  }
 0x3ce   :  { %19 = sbr.rel (!%p17_p4) target bundleno = 1 (0x1), region = 105 }

</bundles_post_ra>
